<compile_context>
chip_gen: v6e
topology: v6e:2x2x1
jax: 0.10.0
libtpu: 0.0.40
codegen_flags: <defaults>
</compile_context>

<pallas_src>
import functools

import numpy as np
import jax
import jax.numpy as jnp
from jax import lax
from jax.experimental import pallas as pl
from jax.experimental.pallas import tpu as pltpu

EXPANSION = 4


# ----------------------------- Fused Pallas kernel --------------------------

def _bottleneck_kernel(*refs, H, W, has_proj):
    """conv1(1x1)+ReLU -> conv2(3x3,pad 1)+ReLU -> conv3(1x1) + shortcut -> ReLU."""
    if has_proj:
        (x_ref, ml_ref, mr_ref, w1_ref, w2_ref, w3_ref, wsc_ref,
         o_ref, buf_ref) = refs
    else:
        (x_ref, ml_ref, mr_ref, w1_ref, w2_ref, w3_ref,
         o_ref, buf_ref) = refs
        wsc_ref = None

    M = H * W
    P = w1_ref.shape[-1]
    cdt = buf_ref.dtype

    xf = x_ref[0]                                   # (M, Cin), compute dtype

    # ---- conv_one: 1x1 conv (no bias) + ReLU -------------------------------
    out1 = jnp.maximum(
        jnp.dot(xf, w1_ref[...], preferred_element_type=jnp.float32), 0.0)

    # ---- stage conv_two's input: shift ONCE, concatenate along channels ----
    # left[m]  = conv1 output at (y, x-1)   (0 at x == 0)
    # right[m] = conv1 output at (y, x+1)   (0 at x == W-1)
    # The (M, 1) masks broadcast across lanes.  Shifts/masks stay in f32.
    # (jnp.roll on the flattened row axis; only 2 shifts per image now, so the
    #  XLU-vs-slice lowering distinction is immaterial.)
    left = jnp.roll(out1, 1, axis=0) * ml_ref[...]
    right = jnp.roll(out1, -1, axis=0) * mr_ref[...]

    # Row-padded, dx-concatenated scratch: rows [0, W) and [(H+1)W, (H+2)W)
    # are the dy zero-padding; lanes hold [x-1 | x | x+1]  (K = 3P).
    # Unconditional border re-zero: the scratch persists across grid steps and
    # "parallel" may shard steps across cores -- do NOT pl.when this.
    buf_ref[pl.ds(0, W)] = jnp.zeros((W, 3 * P), cdt)
    buf_ref[pl.ds((H + 1) * W, W)] = jnp.zeros((W, 3 * P), cdt)
    buf_ref[pl.ds(W, M)] = jnp.concatenate([left, out1, right],
                                           axis=-1).astype(cdt)

    # ---- conv_two: 3x3 conv as 3 deep-K matmuls (one per dy) + ReLU --------
    # Each dy band is a contiguous row-slice of the padded scratch; the three
    # dots accumulate back-to-back into one f32 acc (no interleaved VPU ops).
    acc = jnp.dot(buf_ref[pl.ds(0 * W, M)], w2_ref[0],
                  preferred_element_type=jnp.float32)
    acc += jnp.dot(buf_ref[pl.ds(1 * W, M)], w2_ref[1],
                   preferred_element_type=jnp.float32)
    acc += jnp.dot(buf_ref[pl.ds(2 * W, M)], w2_ref[2],
                   preferred_element_type=jnp.float32)
    out2 = jnp.maximum(acc, 0.0).astype(cdt)

    # ---- conv_three (1x1) + shortcut + final ReLU ---------------------------
    out = jnp.dot(out2, w3_ref[...], preferred_element_type=jnp.float32)
    if has_proj:
        out += jnp.dot(xf, wsc_ref[...], preferred_element_type=jnp.float32)
    else:
        # Identity shortcut (Cin == Cout): direct add, no eye-matrix matmul.
        out += xf.astype(jnp.float32)
    o_ref[0] = jnp.maximum(out, 0.0).astype(o_ref.dtype)


# ----------------------------- Parameters -----------------------------------

def init_bottleneck_params(key, in_planes, planes, stride=1):
    """Deterministic synthetic weights in PyTorch (O, I, kh, kw) layout plus
    the kernel layouts: w1 (Cin,P), w2 (3, 3P, P) dx-concatenated along K,
    w3 (P, 4P), wsc (Cin, 4P)."""
    k1, k2, k3, k4 = jax.random.split(key, 4)
    w1_t = jax.random.normal(k1, (planes, in_planes, 1, 1), jnp.float32) \
        * (2.0 / in_planes) ** 0.5
    w2_t = jax.random.normal(k2, (planes, planes, 3, 3), jnp.float32) \
        * (2.0 / (9 * planes)) ** 0.5
    w3_t = jax.random.normal(k3, (EXPANSION * planes, planes, 1, 1), jnp.float32) \
        * (2.0 / planes) ** 0.5
    w2_k = jnp.transpose(w2_t, (2, 3, 1, 0))            # (kh, kw, I, O)
    params = {
        "w1_t": w1_t, "w2_t": w2_t, "w3_t": w3_t,
        "w1": jnp.transpose(w1_t[:, :, 0, 0], (1, 0)),          # (Cin, P)
        "w2": w2_k.reshape(3, 3 * planes, planes),               # (3, 3P, P)
        "w3": jnp.transpose(w3_t[:, :, 0, 0], (1, 0)),           # (P, 4P)
    }
    if stride != 1 or in_planes != EXPANSION * planes:
        wsc_t = jax.random.normal(
            k4, (EXPANSION * planes, in_planes, 1, 1), jnp.float32) \
            * (2.0 / in_planes) ** 0.5
        params["wsc_t"] = wsc_t
        params["wsc"] = jnp.transpose(wsc_t[:, :, 0, 0], (1, 0))  # (Cin, 4P)
    return params


# ----------------------------- Wrappers --------------------------------------

def bottleneck_forward_flat(x_flat, params, H, W, *, stride=1,
                            compute_dtype=jnp.float32):
    """Native entry point: x_flat is (N, H*W, Cin) channels-last; returns
    (N, H*W, Cout) float32.  Chaining blocks in this layout avoids any
    NCHW<->NHWC transposes between blocks."""
    if stride != 1:
        # TODO(synk): strided conv_two / strided shortcut not implemented.
        raise NotImplementedError("stride != 1 not supported in this kernel")

    N, M, Cin = x_flat.shape
    assert M == H * W
    cdt = compute_dtype

    w1 = params["w1"].astype(cdt)          # (Cin, P)
    w2 = params["w2"].astype(cdt)          # (3, 3P, P)
    w3 = params["w3"].astype(cdt)          # (P, 4P)
    P = w1.shape[1]
    Cout = w3.shape[1]
    has_proj = "wsc" in params

    # (M, 1) column-border masks (multiplicative), broadcast across lanes.
    col = jnp.arange(M, dtype=jnp.int32) % W
    mask_l = (col > 0).astype(jnp.float32).reshape(M, 1)
    mask_r = (col < W - 1).astype(jnp.float32).reshape(M, 1)

    inputs = [x_flat.astype(cdt), mask_l, mask_r, w1, w2, w3]
    in_specs = [
        pl.BlockSpec((1, M, Cin), lambda n: (n, 0, 0)),
        # Constant index_maps: masks and weights stay resident in VMEM.
        pl.BlockSpec((M, 1), lambda n: (0, 0)),
        pl.BlockSpec((M, 1), lambda n: (0, 0)),
        pl.BlockSpec((Cin, P), lambda n: (0, 0)),
        pl.BlockSpec((3, 3 * P, P), lambda n: (0, 0, 0)),
        pl.BlockSpec((P, Cout), lambda n: (0, 0)),
    ]
    if has_proj:
        inputs.append(params["wsc"].astype(cdt))                  # (Cin, 4P)
        in_specs.append(pl.BlockSpec((Cin, Cout), lambda n: (0, 0)))
    else:
        assert Cin == Cout, "identity shortcut requires Cin == expansion*planes"

    # Rough VMEM budget: double-buffered activation blocks + weights, the
    # padded scratch, and headroom for live f32 temporaries.  Only raise the
    # scoped limit when the estimate needs it.
    isz = jnp.dtype(cdt).itemsize
    est = (2 * (M * Cin * isz + M * Cout * 4)
           + 2 * (Cin * P + 9 * P * P + P * Cout
                  + (Cin * Cout if has_proj else 0)) * isz
           + (H + 2) * W * 3 * P * isz
           + 8 * M * max(3 * P, Cout) * 4)
    comp = dict(dimension_semantics=("parallel",))
    if est > 16 * 1024 * 1024:
        comp["vmem_limit_bytes"] = int(min(est, 100 * 1024 * 1024))
    # TODO(synk): for real ResNet shapes (56x56, P>=64, Cout>=256) add an
    # H-band inner loop (1-row halo) and/or a Cout-tile grid axis so live
    # temporaries fit v7x's 64 MiB VMEM, and single-buffer the resident
    # weights (pipeline_mode=pl.Buffered(1)) / store them bf16.

    kern = functools.partial(_bottleneck_kernel, H=H, W=W, has_proj=has_proj)
    return pl.pallas_call(
        kern,
        out_shape=jax.ShapeDtypeStruct((N, M, Cout), jnp.float32),
        grid=(N,),
        in_specs=in_specs,
        out_specs=pl.BlockSpec((1, M, Cout), lambda n: (n, 0, 0)),
        scratch_shapes=[pltpu.VMEM(((H + 2) * W, 3 * P), cdt)],
        compiler_params=pltpu.CompilerParams(**comp),
    )(*inputs)


def bottleneck_forward(x_nchw, params, stride=1, compute_dtype=jnp.float32):
    """PyTorch-layout wrapper: NCHW in, NCHW out (boundary transposes only)."""
    N, Cin, H, W = x_nchw.shape
    x_flat = jnp.transpose(x_nchw, (0, 2, 3, 1)).reshape(N, H * W, Cin)
    out_flat = bottleneck_forward_flat(x_flat, params, H, W, stride=stride,
                                       compute_dtype=compute_dtype)
    Cout = out_flat.shape[-1]
    return jnp.transpose(out_flat.reshape(N, H, W, Cout), (0, 3, 1, 2))


# ----------------------------- Reference (plain JAX) ------------------------

def ref_forward(x_nchw, params, stride=1):
    dn = ("NCHW", "OIHW", "NCHW")
    out = lax.conv_general_dilated(x_nchw, params["w1_t"], (1, 1), "VALID",
                                   dimension_numbers=dn)
    out = jnp.maximum(out, 0.0)
    out = lax.conv_general_dilated(out, params["w2_t"], (stride, stride),
                                   ((1, 1), (1, 1)), dimension_numbers=dn)
    out = jnp.maximum(out, 0.0)
    out = lax.conv_general_dilated(out, params["w3_t"], (1, 1), "VALID",
                                   dimension_numbers=dn)
    if "wsc_t" in params:
        sc = lax.conv_general_dilated(x_nchw, params["wsc_t"],
                                      (stride, stride), "VALID",
                                      dimension_numbers=dn)
    else:
        sc = x_nchw
    return jnp.maximum(out + sc, 0.0)


# ----------------------------- Main ------------------------------------------

if __name__ == "__main__":
    key = jax.random.PRNGKey(0)
    kx, kp, kx2, kp2 = jax.random.split(key, 4)

    N, H, W = 2, 16, 16

    # Config 1: projection shortcut (in_planes != expansion * planes).
    in_planes, planes = 4, 4
    x = jax.random.normal(kx, (N, in_planes, H, W), jnp.float32)
    params = init_bottleneck_params(kp, in_planes, planes, stride=1)
    out = jax.block_until_ready(bottleneck_forward(x, params, stride=1))
    assert out.shape == (N, EXPANSION * planes, H, W)
    np.testing.assert_allclose(np.asarray(out),
                               np.asarray(ref_forward(x, params, stride=1)),
                               rtol=1e-4, atol=1e-4)

    # Config 2: identity shortcut (in_planes == expansion * planes).
    in_planes2, planes2 = 16, 4
    x2 = jax.random.normal(kx2, (N, in_planes2, H, W), jnp.float32)
    params2 = init_bottleneck_params(kp2, in_planes2, planes2, stride=1)
    out2 = jax.block_until_ready(bottleneck_forward(x2, params2, stride=1))
    assert out2.shape == (N, EXPANSION * planes2, H, W)
    np.testing.assert_allclose(np.asarray(out2),
                               np.asarray(ref_forward(x2, params2, stride=1)),
                               rtol=1e-4, atol=1e-4)

    print("KERNEL_OK")
</pallas_src>

<mosaic_0001>
module attributes {stable_mosaic.version = 11 : i64} {
  func.func @_bottleneck_kernel(%arg0: i32, %arg1: memref<1x256x4xf32, #tpu.memory_space<vmem>>, %arg2: memref<256x1xf32, #tpu.memory_space<vmem>>, %arg3: memref<256x1xf32, #tpu.memory_space<vmem>>, %arg4: memref<4x4xf32, #tpu.memory_space<vmem>>, %arg5: memref<3x12x4xf32, #tpu.memory_space<vmem>>, %arg6: memref<4x16xf32, #tpu.memory_space<vmem>>, %arg7: memref<4x16xf32, #tpu.memory_space<vmem>>, %arg8: memref<1x256x16xf32, #tpu.memory_space<vmem>>, %arg9: memref<288x12xf32, #tpu.memory_space<vmem>>) attributes {dimension_semantics = [#tpu.dimension_semantics<parallel>], iteration_bounds = array<i64: 2>, scalar_prefetch = 0 : i64, scratch_operands = 1 : i64, tpu.core_type = #tpu.core_type<tc>, window_params = [{transform_indices = @transform_0, window_bounds = array<i64: 1, 256, 4>}, {pipeline_mode = #tpu.pipeline_mode<synchronous>, transform_indices = @transform_1, window_bounds = array<i64: 256, 1>}, {pipeline_mode = #tpu.pipeline_mode<synchronous>, transform_indices = @transform_2, window_bounds = array<i64: 256, 1>}, {pipeline_mode = #tpu.pipeline_mode<synchronous>, transform_indices = @transform_3, window_bounds = array<i64: 4, 4>}, {pipeline_mode = #tpu.pipeline_mode<synchronous>, transform_indices = @transform_4, window_bounds = array<i64: 3, 12, 4>}, {pipeline_mode = #tpu.pipeline_mode<synchronous>, transform_indices = @transform_5, window_bounds = array<i64: 4, 16>}, {pipeline_mode = #tpu.pipeline_mode<synchronous>, transform_indices = @transform_6, window_bounds = array<i64: 4, 16>}, {transform_indices = @transform_7, window_bounds = array<i64: 1, 256, 16>}]} {
    %c0 = arith.constant 0 : index
    %c0_0 = arith.constant 0 : index
    %c0_1 = arith.constant 0 : index
    %0 = vector.load %arg1[%c0, %c0_0, %c0_1] : memref<1x256x4xf32, #tpu.memory_space<vmem>>, vector<1x256x4xf32>
    %1 = vector.shape_cast %0 : vector<1x256x4xf32> to vector<256x4xf32>
    %c0_2 = arith.constant 0 : index
    %c0_3 = arith.constant 0 : index
    %2 = vector.load %arg4[%c0_2, %c0_3] : memref<4x4xf32, #tpu.memory_space<vmem>>, vector<4x4xf32>
    %cst = arith.constant dense<0.000000e+00> : vector<256x4xf32>
    %3 = tpu.matmul %1, %2, %cst {dimension_numbers = #tpu.dot_dimension_numbers<[1], [0], [0], [1], [0, 0, 1, 1], [], []>} : vector<256x4xf32>, vector<4x4xf32>, vector<256x4xf32> -> vector<256x4xf32>
    %cst_4 = arith.constant 0.000000e+00 : f32
    %4 = vector.broadcast %cst_4 : f32 to vector<256x4xf32>
    %5 = arith.maximumf %3, %4 : vector<256x4xf32>
    %6 = vector.extract_strided_slice %5 {offsets = [255, 0], sizes = [1, 4], strides = [1, 1]} : vector<256x4xf32> to vector<1x4xf32>
    %7 = vector.extract_strided_slice %5 {offsets = [0, 0], sizes = [255, 4], strides = [1, 1]} : vector<256x4xf32> to vector<255x4xf32>
    %8 = tpu.concatenate %6, %7 in 0 : vector<1x4xf32>, vector<255x4xf32> -> vector<256x4xf32>
    %c0_5 = arith.constant 0 : index
    %c0_6 = arith.constant 0 : index
    %9 = vector.load %arg2[%c0_5, %c0_6] : memref<256x1xf32, #tpu.memory_space<vmem>>, vector<256x1xf32>
    %10 = vector.broadcast %9 : vector<256x1xf32> to vector<256x4xf32>
    %11 = arith.mulf %8, %10 : vector<256x4xf32>
    %12 = vector.extract_strided_slice %5 {offsets = [1, 0], sizes = [255, 4], strides = [1, 1]} : vector<256x4xf32> to vector<255x4xf32>
    %13 = vector.extract_strided_slice %5 {offsets = [0, 0], sizes = [1, 4], strides = [1, 1]} : vector<256x4xf32> to vector<1x4xf32>
    %14 = tpu.concatenate %12, %13 in 0 : vector<255x4xf32>, vector<1x4xf32> -> vector<256x4xf32>
    %c0_7 = arith.constant 0 : index
    %c0_8 = arith.constant 0 : index
    %15 = vector.load %arg3[%c0_7, %c0_8] : memref<256x1xf32, #tpu.memory_space<vmem>>, vector<256x1xf32>
    %16 = vector.broadcast %15 : vector<256x1xf32> to vector<256x4xf32>
    %17 = arith.mulf %14, %16 : vector<256x4xf32>
    %cst_9 = arith.constant 0.000000e+00 : f32
    %18 = vector.broadcast %cst_9 : f32 to vector<16x12xf32>
    %c0_10 = arith.constant 0 : index
    %c0_11 = arith.constant 0 : index
    %19 = vector.load %arg9[%c0_10, %c0_11] : memref<288x12xf32, #tpu.memory_space<vmem>>, vector<16x12xf32>
    tpu.vector_store %arg9[%c0_10, %c0_11], %18 {strides = array<i32>} : memref<288x12xf32, #tpu.memory_space<vmem>>, vector<16x12xf32>,
    %cst_12 = arith.constant 0.000000e+00 : f32
    %20 = vector.broadcast %cst_12 : f32 to vector<16x12xf32>
    %c272 = arith.constant 272 : index
    %c0_13 = arith.constant 0 : index
    %21 = vector.load %arg9[%c272, %c0_13] : memref<288x12xf32, #tpu.memory_space<vmem>>, vector<16x12xf32>
    tpu.vector_store %arg9[%c272, %c0_13], %20 {strides = array<i32>} : memref<288x12xf32, #tpu.memory_space<vmem>>, vector<16x12xf32>,
    %22 = tpu.concatenate %11, %5, %17 in 1 : vector<256x4xf32>, vector<256x4xf32>, vector<256x4xf32> -> vector<256x12xf32>
    %c16 = arith.constant 16 : index
    %c0_14 = arith.constant 0 : index
    %23 = vector.load %arg9[%c16, %c0_14] : memref<288x12xf32, #tpu.memory_space<vmem>>, vector<256x12xf32>
    tpu.vector_store %arg9[%c16, %c0_14], %22 {strides = array<i32>} : memref<288x12xf32, #tpu.memory_space<vmem>>, vector<256x12xf32>,
    %c0_15 = arith.constant 0 : index
    %c0_16 = arith.constant 0 : index
    %24 = vector.load %arg9[%c0_15, %c0_16] : memref<288x12xf32, #tpu.memory_space<vmem>>, vector<256x12xf32>
    %c0_17 = arith.constant 0 : index
    %c0_18 = arith.constant 0 : index
    %c0_19 = arith.constant 0 : index
    %25 = vector.load %arg5[%c0_17, %c0_18, %c0_19] : memref<3x12x4xf32, #tpu.memory_space<vmem>>, vector<1x12x4xf32>
    %26 = vector.shape_cast %25 : vector<1x12x4xf32> to vector<12x4xf32>
    %cst_20 = arith.constant dense<0.000000e+00> : vector<256x4xf32>
    %27 = tpu.matmul %24, %26, %cst_20 {dimension_numbers = #tpu.dot_dimension_numbers<[1], [0], [0], [1], [0, 0, 1, 1], [], []>} : vector<256x12xf32>, vector<12x4xf32>, vector<256x4xf32> -> vector<256x4xf32>
    %c16_21 = arith.constant 16 : index
    %c0_22 = arith.constant 0 : index
    %28 = vector.load %arg9[%c16_21, %c0_22] : memref<288x12xf32, #tpu.memory_space<vmem>>, vector<256x12xf32>
    %c1 = arith.constant 1 : index
    %c0_23 = arith.constant 0 : index
    %c0_24 = arith.constant 0 : index
    %29 = vector.load %arg5[%c1, %c0_23, %c0_24] : memref<3x12x4xf32, #tpu.memory_space<vmem>>, vector<1x12x4xf32>
    %30 = vector.shape_cast %29 : vector<1x12x4xf32> to vector<12x4xf32>
    %cst_25 = arith.constant dense<0.000000e+00> : vector<256x4xf32>
    %31 = tpu.matmul %28, %30, %cst_25 {dimension_numbers = #tpu.dot_dimension_numbers<[1], [0], [0], [1], [0, 0, 1, 1], [], []>} : vector<256x12xf32>, vector<12x4xf32>, vector<256x4xf32> -> vector<256x4xf32>
    %32 = arith.addf %27, %31 : vector<256x4xf32>
    %c32 = arith.constant 32 : index
    %c0_26 = arith.constant 0 : index
    %33 = vector.load %arg9[%c32, %c0_26] : memref<288x12xf32, #tpu.memory_space<vmem>>, vector<256x12xf32>
    %c2 = arith.constant 2 : index
    %c0_27 = arith.constant 0 : index
    %c0_28 = arith.constant 0 : index
    %34 = vector.load %arg5[%c2, %c0_27, %c0_28] : memref<3x12x4xf32, #tpu.memory_space<vmem>>, vector<1x12x4xf32>
    %35 = vector.shape_cast %34 : vector<1x12x4xf32> to vector<12x4xf32>
    %cst_29 = arith.constant dense<0.000000e+00> : vector<256x4xf32>
    %36 = tpu.matmul %33, %35, %cst_29 {dimension_numbers = #tpu.dot_dimension_numbers<[1], [0], [0], [1], [0, 0, 1, 1], [], []>} : vector<256x12xf32>, vector<12x4xf32>, vector<256x4xf32> -> vector<256x4xf32>
    %37 = arith.addf %32, %36 : vector<256x4xf32>
    %cst_30 = arith.constant 0.000000e+00 : f32
    %38 = vector.broadcast %cst_30 : f32 to vector<256x4xf32>
    %39 = arith.maximumf %37, %38 : vector<256x4xf32>
    %c0_31 = arith.constant 0 : index
    %c0_32 = arith.constant 0 : index
    %40 = vector.load %arg6[%c0_31, %c0_32] : memref<4x16xf32, #tpu.memory_space<vmem>>, vector<4x16xf32>
    %cst_33 = arith.constant dense<0.000000e+00> : vector<256x16xf32>
    %41 = tpu.matmul %39, %40, %cst_33 {dimension_numbers = #tpu.dot_dimension_numbers<[1], [0], [0], [1], [0, 0, 1, 1], [], []>} : vector<256x4xf32>, vector<4x16xf32>, vector<256x16xf32> -> vector<256x16xf32>
    %c0_34 = arith.constant 0 : index
    %c0_35 = arith.constant 0 : index
    %42 = vector.load %arg7[%c0_34, %c0_35] : memref<4x16xf32, #tpu.memory_space<vmem>>, vector<4x16xf32>
    %cst_36 = arith.constant dense<0.000000e+00> : vector<256x16xf32>
    %43 = tpu.matmul %1, %42, %cst_36 {dimension_numbers = #tpu.dot_dimension_numbers<[1], [0], [0], [1], [0, 0, 1, 1], [], []>} : vector<256x4xf32>, vector<4x16xf32>, vector<256x16xf32> -> vector<256x16xf32>
    %44 = arith.addf %41, %43 : vector<256x16xf32>
    %cst_37 = arith.constant 0.000000e+00 : f32
    %45 = vector.broadcast %cst_37 : f32 to vector<256x16xf32>
    %46 = arith.maximumf %44, %45 : vector<256x16xf32>
    %c0_38 = arith.constant 0 : index
    %c0_39 = arith.constant 0 : index
    %c0_40 = arith.constant 0 : index
    %47 = vector.load %arg8[%c0_38, %c0_39, %c0_40] : memref<1x256x16xf32, #tpu.memory_space<vmem>>, vector<1x256x16xf32>
    %48 = vector.shape_cast %47 : vector<1x256x16xf32> to vector<256x16xf32>
    %49 = vector.shape_cast %46 : vector<256x16xf32> to vector<1x256x16xf32>
    tpu.vector_store %arg8[%c0_38, %c0_39, %c0_40], %49 {strides = array<i32>} : memref<1x256x16xf32, #tpu.memory_space<vmem>>, vector<1x256x16xf32>,
    return
  }
  func.func @transform_0(%arg0: i32) -> (i32, i32, i32) {
    %c0_i32 = arith.constant 0 : i32
    %c0_i32_0 = arith.constant 0 : i32
    %c0_i32_1 = arith.constant 0 : i32
    return %arg0, %c0_i32, %c0_i32_0 : i32, i32, i32
  }
  func.func @transform_1(%arg0: i32) -> (i32, i32) {
    %c0_i32 = arith.constant 0 : i32
    %c0_i32_0 = arith.constant 0 : i32
    %c0_i32_1 = arith.constant 0 : i32
    return %c0_i32, %c0_i32_0 : i32, i32
  }
  func.func @transform_2(%arg0: i32) -> (i32, i32) {
    %c0_i32 = arith.constant 0 : i32
    %c0_i32_0 = arith.constant 0 : i32
    %c0_i32_1 = arith.constant 0 : i32
    return %c0_i32, %c0_i32_0 : i32, i32
  }
  func.func @transform_3(%arg0: i32) -> (i32, i32) {
    %c0_i32 = arith.constant 0 : i32
    %c0_i32_0 = arith.constant 0 : i32
    %c0_i32_1 = arith.constant 0 : i32
    return %c0_i32, %c0_i32_0 : i32, i32
  }
  func.func @transform_4(%arg0: i32) -> (i32, i32, i32) {
    %c0_i32 = arith.constant 0 : i32
    %c0_i32_0 = arith.constant 0 : i32
    %c0_i32_1 = arith.constant 0 : i32
    %c0_i32_2 = arith.constant 0 : i32
    return %c0_i32, %c0_i32_0, %c0_i32_1 : i32, i32, i32
  }
  func.func @transform_5(%arg0: i32) -> (i32, i32) {
    %c0_i32 = arith.constant 0 : i32
    %c0_i32_0 = arith.constant 0 : i32
    %c0_i32_1 = arith.constant 0 : i32
    return %c0_i32, %c0_i32_0 : i32, i32
  }
  func.func @transform_6(%arg0: i32) -> (i32, i32) {
    %c0_i32 = arith.constant 0 : i32
    %c0_i32_0 = arith.constant 0 : i32
    %c0_i32_1 = arith.constant 0 : i32
    return %c0_i32, %c0_i32_0 : i32, i32
  }
  func.func @transform_7(%arg0: i32) -> (i32, i32, i32) {
    %c0_i32 = arith.constant 0 : i32
    %c0_i32_0 = arith.constant 0 : i32
    %c0_i32_1 = arith.constant 0 : i32
    return %arg0, %c0_i32, %c0_i32_0 : i32, i32, i32
  }
}

</mosaic_0001>

<bundles_post_ra>
// kernel: tpu_custom_call.1
= control target key start
LH: loop header
LB: loop body
LE: loop exit
PB: predicated region body
PF: predicated region fallthrough
CT: control target
= control target key end

     0   :  { %s4186_s24 = smov 0   ;;  %s5640_s0 = inlined_call_operand.vmem [shape: f32[2,256,4], index: 0, kind: input, shape index: {}]   ;;  %s5641_s1 = inlined_call_operand.vmem [shape: f32[256,1], index: 1, kind: input, shape index: {}]   ;;  %s5642_s2 = inlined_call_operand.vmem [shape: f32[256,1], index: 2, kind: input, shape index: {}]   ;;  %s5643_s3 = inlined_call_operand.vmem [shape: f32[4,4], index: 3, kind: input, shape index: {}]   ;;  %s5644_s4 = inlined_call_operand.vmem [shape: f32[3,12,4], index: 4, kind: input, shape index: {}]   ;;  %s5645_s5 = inlined_call_operand.vmem [shape: f32[4,16], index: 5, kind: input, shape index: {}]   ;;  %s5646_s6 = inlined_call_operand.vmem [shape: f32[4,16], index: 6, kind: input, shape index: {}]   ;;  %s5647_s7 = inlined_call_operand.vmem [shape: f32[2,256,16], index: 7, kind: output, shape index: {}]  }
   0x1 LB: > { %s3366_s25 = sadd.s32 4294967295, %s4140_s24   ;;  %p3370_p0 = scmp.ge.s32.totalorder %s4140_s24, 1  ;;  %s4140_s24 = sphi %s4186_s24, %s17_s24  }
   0x2   : > { %p237_p1 = scmp.lt.s32.totalorder %s4140_s24, 3 }
   0x4   : > { %p238_p2 = pnand %p3370_p0, %p237_p1 }
   0x6   : > { %241 = sbr.rel (%p238_p2) target bundleno = 934 (0x3a6), region = 48 }
   0xb   : > { %v1124_v0 = vld [vmem:[%s5642_s2 + $0x10] sm:$0xff]  ;;  %v1122_v1 = vld [vmem:[%s5642_s2] sm:$0xff]  ;;  %vm409_vm0 = vcmask 1043456   ;;  %p269_p3 = scmp.lt.s32.totalorder %s3366_s25, 1  ;;  %v4142_v2 = vmov 0   ;;  %v1125_v4 = vld [vmem:[%s5642_s2 + $0x18] sm:$0xff] }
   0xc   : > { %4101 = vset.pattern.permute.xlu1 %v4142_v2  ;;  %4100 = vset.pattern.permute.xlu0 %v4142_v2  ;;  %v311_v3 = vld [vmem:[%s5643_s3] sm:$0xf]  ;;  %v1123_v5 = vld [vmem:[%s5642_s2 + $0x8] sm:$0xff]  ;;  %vm312_vm1 = vcmask 31744   ;;  %v1129_v13 = vld [vmem:[%s5642_s2 + $0x38] sm:$0xff]  ;;  %vm1346_vm2 = vcmask 97280  }
   0xd   : > { %1166 = vperm.xlu1 %4101, %v1124_v0   ;;  %1156 = vperm.xlu0 %4100, %v1122_v1   ;;  %s5689_s25 = smov (!%p269_p3, %s3366_s25), 1  ;;  %v1127_v9 = vld [vmem:[%s5642_s2 + $0x28] sm:$0xff]  ;;  %v1126_v10 = vld [vmem:[%s5642_s2 + $0x20] sm:$0xff]  ;;  %v1128_v14 = vld [vmem:[%s5642_s2 + $0x30] sm:$0xff]  ;;  %s4144_s29 = smov 4   ;;  %vm1024_vm3 = vcmask 1046528  }
   0xe   : > { %3782 = vmatprep.subr.msk.mxu0 %vm409_vm0, %v311_v3  ;;  %s3579_s13 = sshll.u32 %s5689_s25, 8  ;;  %v1131_v17 = vld [vmem:[%s5642_s2 + $0x48] sm:$0xff]  ;;  %v1130_v18 = vld [vmem:[%s5642_s2 + $0x40] sm:$0xff]  ;;  %v1133_v21 = vld [vmem:[%s5642_s2 + $0x58] sm:$0xff]  ;;  %vm704_vm4 = vcmask 1040384   ;;  %s4145_s11 = smov 8  }
   0xf   : > { %3783 = vmatpush3.msk.msra.mxu0 %vm409_vm0, %v311_v3  ;;  %s4219_s16 = scalar_lea.vmem %s5640_s0, %s3579_s13  ;;  %v1132_v22 = vld [vmem:[%s5642_s2 + $0x50] sm:$0xff]  ;;  %v1135_v25 = vld [vmem:[%s5642_s2 + $0x68] sm:$0xff]  ;;  %v1134_v26 = vld [vmem:[%s5642_s2 + $0x60] sm:$0xff]  ;;  %vm1607_vm5 = vcmask 64512   ;;  %s5562_s23 = scalar_lea.vmem %s5647_s7, %s3579_s13  ;;  %vm3278_vm6 = vcmask 130048  }
  0x10   : > { %v279_v6 = vld [vmem:[%s4219_s16] sm:$0xff]  ;;  %v280_v7 = vld [vmem:[%s4219_s16 + $0x8] sm:$0xff]  ;;  %v281_v8 = vld [vmem:[%s4219_s16 + $0x10] sm:$0xff] }
  0x11   : > { %1171 = vperm.xlu1 %4101, %v1125_v4   ;;  %1161 = vperm.xlu0 %4100, %v1123_v5   ;;  %v282_v11 = vld [vmem:[%s4219_s16 + $0x18] sm:$0xff]  ;;  %v283_v12 = vld [vmem:[%s4219_s16 + $0x20] sm:$0xff]  ;;  %v284_v15 = vld [vmem:[%s4219_s16 + $0x28] sm:$0xff] }
  0x12   : > { %3784 = vmatprep.mubr.msk.f32.mxu0 %vm312_vm1, %v279_v6  ;;  %v285_v16 = vld [vmem:[%s4219_s16 + $0x30] sm:$0xff]  ;;  %v286_v19 = vld [vmem:[%s4219_s16 + $0x38] sm:$0xff]  ;;  %v287_v20 = vld [vmem:[%s4219_s16 + $0x40] sm:$0xff] }
  0x13   : > { %3785 = vmatmul.mubr.msk.f32.vlgmr.msra.gmra.mxu0 %vm312_vm1, %v280_v7  ;;  %v288_v23 = vld [vmem:[%s4219_s16 + $0x48] sm:$0xff]  ;;  %v289_v24 = vld [vmem:[%s4219_s16 + $0x50] sm:$0xff]  ;;  %v290_v27 = vld [vmem:[%s4219_s16 + $0x58] sm:$0xff] }
  0x14   : > { %3787 = vmatprep.mubr.msk.f32.mxu0 %vm312_vm1, %v281_v8  ;;  %v291_v28 = vld [vmem:[%s4219_s16 + $0x60] sm:$0xff]  ;;  %v1137_v29 = vld [vmem:[%s5642_s2 + $0x78] sm:$0xff]  ;;  %v1136_v30 = vld [vmem:[%s5642_s2 + $0x70] sm:$0xff] }
  0x15   : > { %1181 = vperm.xlu1 %4101, %v1127_v9   ;;  %1176 = vperm.xlu0 %4100, %v1126_v10   ;;  %v292_v31 = vld [vmem:[%s4219_s16 + $0x68] sm:$0xff]  ;;  %v293_v32 = vld [vmem:[%s4219_s16 + $0x70] sm:$0xff]  ;;  %v1138_v34 = vld [vmem:[%s5642_s2 + $0x80] sm:$0xff] }
  0x16   : > { %v1139_v33 = vld [vmem:[%s5642_s2 + $0x88] sm:$0xff]  ;;  %v294_v35 = vld [vmem:[%s4219_s16 + $0x78] sm:$0xff]  ;;  %v295_v36 = vld [vmem:[%s4219_s16 + $0x80] sm:$0xff] }
  0x17   : > { %3788 = vmatmul.mubr.msk.f32.gmra.mxu0 %vm312_vm1, %v282_v11  ;;  %v1141_v37 = vld [vmem:[%s5642_s2 + $0x98] sm:$0xff]  ;;  %v1140_v38 = vld [vmem:[%s5642_s2 + $0x90] sm:$0xff]  ;;  %v296_v39 = vld [vmem:[%s4219_s16 + $0x88] sm:$0xff] }
  0x18   : > { %3790 = vmatprep.mubr.msk.f32.mxu0 %vm312_vm1, %v283_v12  ;;  %v297_v40 = vld [vmem:[%s4219_s16 + $0x90] sm:$0xff]  ;;  %v1143_v41 = vld [vmem:[%s5642_s2 + $0xa8] sm:$0xff]  ;;  %v1142_v42 = vld [vmem:[%s5642_s2 + $0xa0] sm:$0xff] }
  0x19   : > { %1191 = vperm.xlu1 %4101, %v1129_v13   ;;  %1186 = vperm.xlu0 %4100, %v1128_v14   ;;  %v298_v43 = vld [vmem:[%s4219_s16 + $0x98] sm:$0xff]  ;;  %v299_v44 = vld [vmem:[%s4219_s16 + $0xa0] sm:$0xff]  ;;  %v1144_v46 = vld [vmem:[%s5642_s2 + $0xb0] sm:$0xff] }
  0x1a   : > { %v1145_v45 = vld [vmem:[%s5642_s2 + $0xb8] sm:$0xff]  ;;  %v300_v47 = vld [vmem:[%s4219_s16 + $0xa8] sm:$0xff]  ;;  %v301_v48 = vld [vmem:[%s4219_s16 + $0xb0] sm:$0xff] }
  0x1b   : > { %3791 = vmatmul.mubr.msk.f32.gmra.mxu0 %vm312_vm1, %v284_v15  ;;  %v1147_v49 = vld [vmem:[%s5642_s2 + $0xc8] sm:$0xff]  ;;  %v1146_v50 = vld [vmem:[%s5642_s2 + $0xc0] sm:$0xff]  ;;  %v302_v51 = vld [vmem:[%s4219_s16 + $0xb8] sm:$0xff] }
  0x1c   : > { %3793 = vmatprep.mubr.msk.f32.mxu0 %vm312_vm1, %v285_v16  ;;  %v303_v52 = vld [vmem:[%s4219_s16 + $0xc0] sm:$0xff]  ;;  %v1149_v53 = vld [vmem:[%s5642_s2 + $0xd8] sm:$0xff]  ;;  %v1148_v54 = vld [vmem:[%s5642_s2 + $0xd0] sm:$0xff] }
  0x1d   : > { %1201 = vperm.xlu1 %4101, %v1131_v17   ;;  %1196 = vperm.xlu0 %4100, %v1130_v18   ;;  %v304_v55 = vld [vmem:[%s4219_s16 + $0xc8] sm:$0xff]  ;;  %v305_v56 = vld [vmem:[%s4219_s16 + $0xd0] sm:$0xff]  ;;  %v1150_v57 = vld [vmem:[%s5642_s2 + $0xe0] sm:$0xff] }
  0x1e   : > { %v800_v58 = vld [vmem:[%s5641_s1] sm:$0xff]  ;;  %v306_v59 = vld [vmem:[%s4219_s16 + $0xd8] sm:$0xff]  ;;  %v1151_v61 = vld [vmem:[%s5642_s2 + $0xe8] sm:$0xff] }
  0x1f   : > { %3794 = vmatmul.mubr.msk.f32.gmra.mxu0 %vm312_vm1, %v286_v19  ;;  %v307_v60 = vld [vmem:[%s4219_s16 + $0xe0] sm:$0xff]  ;;  %v801_v62 = vld [vmem:[%s5641_s1 + $0x8] sm:$0xff]  ;;  %v309_v0 = vld [vmem:[%s4219_s16 + $0xf0] sm:$0xff] }
  0x20   : > { %3796 = vmatprep.mubr.msk.f32.mxu0 %vm312_vm1, %v287_v20  ;;  %v308_v63 = vld [vmem:[%s4219_s16 + $0xe8] sm:$0xff]  ;;  %v1152_v1 = vld [vmem:[%s5642_s2 + $0xf0] sm:$0xff]  ;;  %v310_v3 = vld [vmem:[%s4219_s16 + $0xf8] sm:$0xff] }
  0x21   : > { %1211 = vperm.xlu1 %4101, %v1133_v21   ;;  %1206 = vperm.xlu0 %4100, %v1132_v22   ;;  %v802_v2 = vld [vmem:[%s5641_s1 + $0x10] sm:$0xff]  ;;  %v1153_v4 = vld [vmem:[%s5642_s2 + $0xf8] sm:$0xff]  ;;  %v805_v6 = vld [vmem:[%s5641_s1 + $0x28] sm:$0xff] }
  0x22   : > { %v803_v5 = vld [vmem:[%s5641_s1 + $0x18] sm:$0xff]  ;;  %v804_v7 = vld [vmem:[%s5641_s1 + $0x20] sm:$0xff]  ;;  %v806_v9 = vld [vmem:[%s5641_s1 + $0x30] sm:$0xff] }
  0x23   : > { %3797 = vmatmul.mubr.msk.f32.gmra.mxu0 %vm312_vm1, %v288_v23  ;;  %v807_v8 = vld [vmem:[%s5641_s1 + $0x38] sm:$0xff]  ;;  %v809_v10 = vld [vmem:[%s5641_s1 + $0x48] sm:$0xff]  ;;  %v808_v11 = vld [vmem:[%s5641_s1 + $0x40] sm:$0xff] }
  0x24   : > { %3799 = vmatprep.mubr.msk.f32.mxu0 %vm312_vm1, %v289_v24  ;;  %v811_v12 = vld [vmem:[%s5641_s1 + $0x58] sm:$0xff]  ;;  %v810_v13 = vld [vmem:[%s5641_s1 + $0x50] sm:$0xff]  ;;  %v813_v14 = vld [vmem:[%s5641_s1 + $0x68] sm:$0xff] }
  0x25   : > { %1221 = vperm.xlu1 %4101, %v1135_v25   ;;  %1216 = vperm.xlu0 %4100, %v1134_v26   ;;  %v812_v15 = vld [vmem:[%s5641_s1 + $0x60] sm:$0xff]  ;;  %v815_v16 = vld [vmem:[%s5641_s1 + $0x78] sm:$0xff]  ;;  %v814_v17 = vld [vmem:[%s5641_s1 + $0x70] sm:$0xff] }
  0x26   : > { %v817_v18 = vld [vmem:[%s5641_s1 + $0x88] sm:$0xff]  ;;  %v816_v19 = vld [vmem:[%s5641_s1 + $0x80] sm:$0xff]  ;;  %v819_v20 = vld [vmem:[%s5641_s1 + $0x98] sm:$0xff] }
  0x27   : > { %3800 = vmatmul.mubr.msk.f32.gmra.mxu0 %vm312_vm1, %v290_v27  ;;  %v818_v21 = vld [vmem:[%s5641_s1 + $0x90] sm:$0xff]  ;;  %v821_v22 = vld [vmem:[%s5641_s1 + $0xa8] sm:$0xff]  ;;  %v820_v23 = vld [vmem:[%s5641_s1 + $0xa0] sm:$0xff] }
  0x28   : > { %3802 = vmatprep.mubr.msk.f32.mxu0 %vm312_vm1, %v291_v28  ;;  %v823_v24 = vld [vmem:[%s5641_s1 + $0xb8] sm:$0xff]  ;;  %v822_v25 = vld [vmem:[%s5641_s1 + $0xb0] sm:$0xff]  ;;  %v825_v26 = vld [vmem:[%s5641_s1 + $0xc8] sm:$0xff] }
  0x29   : > { %1231 = vperm.xlu1 %4101, %v1137_v29   ;;  %1226 = vperm.xlu0 %4100, %v1136_v30   ;;  %v824_v27 = vld [vmem:[%s5641_s1 + $0xc0] sm:$0xff]  ;;  %v827_v28 = vld [vmem:[%s5641_s1 + $0xd8] sm:$0xff]  ;;  %v826_v29 = vld [vmem:[%s5641_s1 + $0xd0] sm:$0xff] }
  0x2a   : > { %v829_v30 = vld [vmem:[%s5641_s1 + $0xe8] sm:$0xff] }
  0x2b   : > { %3803 = vmatmul.mubr.msk.f32.gmra.mxu0 %vm312_vm1, %v292_v31  ;;  %v828_v31 = vld [vmem:[%s5641_s1 + $0xe0] sm:$0xff] }
  0x2c   : > { %3805 = vmatprep.mubr.msk.f32.mxu0 %vm312_vm1, %v293_v32  ;;  %v831_v32 = vld [vmem:[%s5641_s1 + $0xf8] sm:$0xff] }
  0x2d   : > { %1241 = vperm.xlu1 %4101, %v1139_v33   ;;  %1236 = vperm.xlu0 %4100, %v1138_v34   ;;  %v830_v33 = vld [vmem:[%s5641_s1 + $0xf0] sm:$0xff] }
  0x2f   : > { %3806 = vmatmul.mubr.msk.f32.gmra.mxu0 %vm312_vm1, %v294_v35 }
  0x30   : > { %3808 = vmatprep.mubr.msk.f32.mxu0 %vm312_vm1, %v295_v36 }
  0x31   : > { %1251 = vperm.xlu1 %4101, %v1141_v37   ;;  %1246 = vperm.xlu0 %4100, %v1140_v38  }
  0x33   : > { %3809 = vmatmul.mubr.msk.f32.gmra.mxu0 %vm312_vm1, %v296_v39 }
  0x34   : > { %3811 = vmatprep.mubr.msk.f32.mxu0 %vm312_vm1, %v297_v40 }
  0x35   : > { %1261 = vperm.xlu1 %4101, %v1143_v41   ;;  %1256 = vperm.xlu0 %4100, %v1142_v42  }
  0x37   : > { %3812 = vmatmul.mubr.msk.f32.gmra.mxu0 %vm312_vm1, %v298_v43 }
  0x38   : > { %3814 = vmatprep.mubr.msk.f32.mxu0 %vm312_vm1, %v299_v44 }
  0x39   : > { %1271 = vperm.xlu1 %4101, %v1145_v45   ;;  %1266 = vperm.xlu0 %4100, %v1144_v46  }
  0x3b   : > { %3815 = vmatmul.mubr.msk.f32.gmra.mxu0 %vm312_vm1, %v300_v47 }
  0x3c   : > { %3817 = vmatprep.mubr.msk.f32.mxu0 %vm312_vm1, %v301_v48 }
  0x3d   : > { %1281 = vperm.xlu1 %4101, %v1147_v49   ;;  %1276 = vperm.xlu0 %4100, %v1146_v50  }
  0x3f   : > { %3818 = vmatmul.mubr.msk.f32.gmra.mxu0 %vm312_vm1, %v302_v51 }
  0x40   : > { %3820 = vmatprep.mubr.msk.f32.mxu0 %vm312_vm1, %v303_v52 }
  0x41   : > { %1291 = vperm.xlu1 %4101, %v1149_v53   ;;  %1286 = vperm.xlu0 %4100, %v1148_v54  }
  0x43   : > { %3821 = vmatmul.mubr.msk.f32.gmra.mxu0 %vm312_vm1, %v304_v55 }
  0x44   : > { %3823 = vmatprep.mubr.msk.f32.mxu0 %vm312_vm1, %v305_v56 }
  0x45   : > { %1296 = vperm.xlu0 %4100, %v1150_v57   ;;  %834 = vperm.xlu1 %4101, %v800_v58  }
  0x47   : > { %3824 = vmatmul.mubr.msk.f32.gmra.mxu0 %vm312_vm1, %v306_v59 }
  0x48   : > { %3826 = vmatprep.mubr.msk.f32.mxu0 %vm312_vm1, %v307_v60 }
  0x49   : > { %1301 = vperm.xlu0 %4100, %v1151_v61   ;;  %839 = vperm.xlu1 %4101, %v801_v62  }
  0x4b   : > { %3827 = vmatmul.mubr.msk.f32.gmra.mxu0 %vm312_vm1, %v308_v63 }
  0x4c   : > { %3829 = vmatprep.mubr.msk.f32.mxu0 %vm312_vm1, %v309_v0 }
  0x4d   : > { %1306 = vperm.xlu0 %4100, %v1152_v1   ;;  %844 = vperm.xlu1 %4101, %v802_v2  }
  0x4f   : > { %3830 = vmatmul.mubr.msk.f32.gmra.mxu0 %vm312_vm1, %v310_v3 }
  0x51   : > { %1311 = vperm.xlu0 %4100, %v1153_v4   ;;  %849 = vperm.xlu1 %4101, %v803_v5  }
  0x55   : > { %859 = vperm.xlu0 %4100, %v805_v6   ;;  %854 = vperm.xlu1 %4101, %v804_v7  }
  0x59   : > { %869 = vperm.xlu0 %4100, %v807_v8   ;;  %864 = vperm.xlu1 %4101, %v806_v9   ;;  %v4143_v8 = vmov 0.0  }
  0x5a   : > { %1347 = vst.msk [vmem:[#allocation2] sm:$0xff] %vm1346_vm2, %v4143_v8  ;;  %1348 = vst.msk [vmem:[#allocation2 + $0x8] sm:$0xff] %vm1346_vm2, %v4143_v8 }
  0x5b   : > { %1349 = vst.msk [vmem:[#allocation2 + $0x110] sm:$0xff] %vm1346_vm2, %v4143_v8  ;;  %1350 = vst.msk [vmem:[#allocation2 + $0x118] sm:$0xff] %vm1346_vm2, %v4143_v8 }
  0x5d   : > { %879 = vperm.xlu0 %4100, %v809_v10   ;;  %874 = vperm.xlu1 %4101, %v808_v11  }
  0x61   : > { %889 = vperm.xlu0 %4100, %v811_v12   ;;  %884 = vperm.xlu1 %4101, %v810_v13  }
  0x65   : > { %899 = vperm.xlu0 %4100, %v813_v14   ;;  %894 = vperm.xlu1 %4101, %v812_v15   ;;  %v1705_v14 = vld [vmem:[%s5644_s4 + $0x8] sm:$0xf]  ;;  %v1704_v15 = vld [vmem:[%s5644_s4] sm:$0xff] }
  0x66   : > { %3884 = vmatprep.subr.msk.mxu0 %vm409_vm0, %v1705_v14 }
  0x67   : > { %3885 = vmatpush3.msk.msra.mxu0 %vm409_vm0, %v1705_v14 }
  0x68   : > { %3886 = vmatprep.subr.mxu0 %v1704_v15 }
  0x69   : > { %909 = vperm.xlu0 %4100, %v815_v16   ;;  %904 = vperm.xlu1 %4101, %v814_v17  }
  0x6a   : > { %3887 = vmatpush3.msra.mxu0 %v1704_v15 }
  0x6d   : > { %919 = vperm.xlu0 %4100, %v817_v18   ;;  %914 = vperm.xlu1 %4101, %v816_v19  }
  0x71   : > { %929 = vperm.xlu0 %4100, %v819_v20   ;;  %924 = vperm.xlu1 %4101, %v818_v21  }
  0x75   : > { %939 = vperm.xlu0 %4100, %v821_v22   ;;  %934 = vperm.xlu1 %4101, %v820_v23   ;;  %v1672_v23 = vld [vmem:[#allocation2] sm:$0xff] }
  0x76   : > { %3888 = vmatprep.mubr.msk.f32.mxu0 %vm1346_vm2, %v1672_v23 }
  0x79   : > { %949 = vperm.xlu0 %4100, %v823_v24   ;;  %944 = vperm.xlu1 %4101, %v822_v25  }
  0x7d   : > { %959 = vperm.xlu0 %4100, %v825_v26   ;;  %954 = vperm.xlu1 %4101, %v824_v27   ;;  %v1673_v27 = vld [vmem:[#allocation2 + $0x8] sm:$0xff] }
  0x7e   : > { %3889 = vmatmul.mubr.msk.f32.vlgmr.msra.gmra.mxu0 %vm1346_vm2, %v1673_v27 }
  0x81   : > { %969 = vperm.xlu0 %4100, %v827_v28   ;;  %964 = vperm.xlu1 %4101, %v826_v29   ;;  %v3409_v28 = vld [vmem:[%s5644_s4 + $0x18] sm:$0xf] }
  0x82   : > { %3832 = vmatprep.subr.msk.mxu1 %vm409_vm0, %v3409_v28 }
  0x83   : > { %3833 = vmatpush3.msk.msra.mxu1 %vm409_vm0, %v3409_v28 }
  0x85   : > { %979 = vperm.xlu0 %4100, %v829_v30   ;;  %974 = vperm.xlu1 %4101, %v828_v31   ;;  %v3408_v31 = vld [vmem:[%s5644_s4 + $0x10] sm:$0xff] }
  0x86   : > { %3834 = vmatprep.subr.mxu1 %v3408_v31 }
  0x87   : > { %3835 = vmatpush3.msra.mxu1 %v3408_v31 }
  0x88   : > { %v4465_v34 = vpop.permute.xlu1 %1166  ;;  %v4467_v35 = vpop.permute.xlu0 %1156 }
  0x89   : > { %989 = vperm.xlu0 %4100, %v831_v32   ;;  %984 = vperm.xlu1 %4101, %v830_v33  }
  0x8c   : > { %v4469_v36 = vpop.permute.xlu1 %1171  ;;  %v4471_v37 = vpop.permute.xlu0 %1161 }
  0x90   : > { %v4473_v38 = vpop.permute.xlu1 %1181  ;;  %v4475_v39 = vpop.permute.xlu0 %1176 }
  0x94   : > { %v4477_v40 = vpop.permute.xlu1 %1191  ;;  %v4479_v41 = vpop.permute.xlu0 %1186 }
  0x98   : > { %v4481_v42 = vpop.permute.xlu1 %1201  ;;  %v4483_v43 = vpop.permute.xlu0 %1196 }
  0x9c   : > { %v4485_v44 = vpop.permute.xlu1 %1211  ;;  %v4487_v45 = vpop.permute.xlu0 %1206 }
  0xa0   : > { %v4489_v46 = vpop.permute.xlu1 %1221  ;;  %v4491_v47 = vpop.permute.xlu0 %1216 }
  0xa4   : > { %v4493_v48 = vpop.permute.xlu1 %1231  ;;  %v4495_v49 = vpop.permute.xlu0 %1226 }
  0xa8   : > { %v4497_v50 = vpop.permute.xlu1 %1241  ;;  %v4499_v51 = vpop.permute.xlu0 %1236 }
  0xac   : > { %v4501_v52 = vpop.permute.xlu1 %1251  ;;  %v4503_v53 = vpop.permute.xlu0 %1246 }
  0xb0   : > { %v4505_v54 = vpop.permute.xlu1 %1261  ;;  %v4507_v55 = vpop.permute.xlu0 %1256 }
  0xb4   : > { %v4509_v56 = vpop.permute.xlu1 %1271  ;;  %v4511_v57 = vpop.permute.xlu0 %1266 }
  0xb8   : > { %v4513_v58 = vpop.permute.xlu1 %1281  ;;  %v4515_v59 = vpop.permute.xlu0 %1276 }
  0xbc   : > { %v4517_v60 = vpop.permute.xlu1 %1291  ;;  %v4519_v61 = vpop.permute.xlu0 %1286 }
  0xc0   : > { %v4521_v62 = vpop.permute.xlu0 %1296  ;;  %v4523_v63 = vpop.permute.xlu1 %834 }
  0xc4   : > { %v4525_v0 = vpop.permute.xlu0 %1301  ;;  %v840_v1 = vpop.permute.xlu1 %839 }
  0xc5   : > { %5650 = vst [vmem:[#allocation3_spill] sm:$0xff] %v4525_v0 }
  0xc8   : > { %v4527_v2 = vpop.permute.xlu0 %1306  ;;  %v4529_v3 = vpop.permute.xlu1 %844 }
  0xcc   : > { %v4531_v4 = vpop.permute.xlu0 %1311  ;;  %v4533_v5 = vpop.permute.xlu1 %849 }
  0xcd   : > { %5651 = vst [vmem:[#allocation4_spill] sm:$0xff] %v4531_v4 }
  0xd0   : > { %v4535_v6 = vpop.permute.xlu0 %859  ;;  %v4537_v7 = vpop.permute.xlu1 %854 }
  0xd3   : > { %v3786_v9 = vpop.f32.mrf.mxu0 }
  0xd4   : > { %v639_v10 = vmax.f32 %v3786_v9, 0.0  ;;  %v4543_v11 = vpop.permute.xlu0 %869  ;;  %v4545_v12 = vpop.permute.xlu1 %864 }
  0xd5   : > { %v479_v13 = vpop.f32.mrf.mxu0 }
  0xd6   : > { %v4553_v16 = vmax.f32 %v479_v13, 0.0  ;;  %1353 = vrot.lane.b32.xlu0 %v639_v10, %s4144_s29  ;;  %v1026_v18 = vrot.slane %v639_v10, 1  ;;  %v706_v24 = vrot.slane %v639_v10, 7 }
  0xd7   : > { %v3789_v17 = vpop.f32.mrf.mxu0 }
  0xd8   : > { %v5648_v19 = vrot.slane %v4553_v16, 7  ;;  %v5649_v20 = vrot.slane %v4553_v16, 1  ;;  %v4560_v21 = vpop.permute.xlu0 %879  ;;  %v4562_v22 = vpop.permute.xlu1 %874  ;;  %v641_v25 = vmax.f32 %v3789_v17, 0.0 }
  0xd9   : > { %v489_v26 = vpop.f32.mrf.mxu0 }
  0xda   : > { %v640_v29 = vmax.f32 %v489_v26, 0.0  ;;  %1351 = vrot.lane.b32.xlu0 %v4553_v16, %s4144_s29  ;;  %v1027_v30 = vsel %vm1024_vm3, %v5649_v20, %v1026_v18  ;;  %v707_v8 = vsel %vm704_vm4, %v5648_v19, %v706_v24  ;;  %v710_v23 = vrot.slane %v641_v25, 7 }
  0xdb   : > { %v3792_v32 = vpop.f32.mrf.mxu0  ;;  %v1314_v33 = vmul.f32 %v4467_v35, %v1027_v30  ;;  %v4588_v17 = vmul.f32 %v840_v1, %v707_v8  ;;  %v1030_v26 = vrot.slane %v641_v25, 1 }
  0xdc   : > { %v708_v9 = vrot.slane %v640_v29, 7  ;;  %v1028_v10 = vrot.slane %v640_v29, 1  ;;  %v4582_v13 = vmax.f32 %v3792_v32, 0.0  ;;  %v4584_v14 = vpop.permute.xlu0 %889  ;;  %v4586_v15 = vpop.permute.xlu1 %884 }
  0xdd   : > { %5652 = vst [vmem:[#allocation5_spill] sm:$0xff] %v4588_v17  ;;  %1479 = vrot.lane.b32.xlu1 %v1314_v33, %s4145_s11  ;;  %v499_v35 = vpop.f32.mrf.mxu0 }
  0xde   : > { %v642_v27 = vmax.f32 %v499_v35, 0.0  ;;  %1357 = vrot.lane.b32.xlu0 %v641_v25, %s4144_s29  ;;  %v1029_v30 = vsel %vm1024_vm3, %v1026_v18, %v1028_v10  ;;  %v714_v32 = vrot.slane %v4582_v13, 7  ;;  %v711_v28 = vsel %vm704_vm4, %v708_v9, %v710_v23 }
  0xdf   : > { %v3795_v19 = vpop.f32.mrf.mxu0  ;;  %v1315_v1 = vmul.f32 %v4471_v37, %v1029_v30  ;;  %v709_v8 = vsel %vm704_vm4, %v706_v24, %v708_v9  ;;  %v1031_v25 = vsel %vm1024_vm3, %v1028_v10, %v1030_v26  ;;  %v4607_v31 = vmul.f32 %v4533_v5, %v711_v28 }
  0xe0   : > { %v712_v20 = vrot.slane %v642_v27, 7  ;;  %v1032_v33 = vrot.slane %v642_v27, 1  ;;  %v4598_v4 = vmax.f32 %v3795_v19, 0.0  ;;  %v4600_v0 = vpop.permute.xlu1 %894  ;;  %v4603_v35 = vpop.permute.xlu0 %899  ;;  %v4610_v37 = vmul.f32 %v4529_v3, %v709_v8 }
  0xe1   : > { %1481 = vrot.lane.b32.xlu1 %v1315_v1, %s4145_s11  ;;  %v509_v18 = vpop.f32.mrf.mxu0  ;;  %v1316_v10 = vmul.f32 %v4465_v34, %v1031_v25  ;;  %v1034_v17 = vrot.slane %v4582_v13, 1 }
  0xe2   : > { %v4612_v24 = vmax.f32 %v509_v18, 0.0  ;;  %1355 = vrot.lane.b32.xlu0 %v640_v29, %s4144_s29  ;;  %v718_v19 = vrot.slane %v4598_v4, 7  ;;  %v715_v30 = vsel %vm704_vm4, %v712_v20, %v714_v32  ;;  %v713_v1 = vsel %vm704_vm4, %v710_v23, %v712_v20 }
  0xe3   : > { %v3798_v9 = vpop.f32.mrf.mxu0  ;;  %v1033_v3 = vsel %vm1024_vm3, %v1030_v26, %v1032_v33  ;;  %v4626_v8 = vmul.f32 %v4535_v6, %v715_v30  ;;  %v4629_v34 = vmul.f32 %v4537_v7, %v713_v1 }
  0xe4   : > { %v716_v5 = vrot.slane %v4612_v24, 7  ;;  %v4621_v28 = vmax.f32 %v3798_v9, 0.0  ;;  %v4631_v25 = vpop.permute.xlu1 %904  ;;  %v4638_v18 = vpop.permute.xlu0 %909  ;;  %v1317_v9 = vmul.f32 %v4469_v36, %v1033_v3  ;;  %v1036_v7 = vrot.slane %v4612_v24, 1 }
  0xe5   : > { %1483 = vrot.lane.b32.xlu1 %v1316_v10, %s4145_s11  ;;  %v519_v29 = vpop.f32.mrf.mxu0  ;;  %5653 = vst [vmem:[#allocation6_spill] sm:$0xff] %v4626_v8  ;;  %5654 = vst [vmem:[#allocation7_spill] sm:$0xff] %v4629_v34  ;;  %v1038_v34 = vrot.slane %v4598_v4, 1 }
  0xe6   : > { %v4633_v20 = vmax.f32 %v519_v29, 0.0  ;;  %1361 = vrot.lane.b32.xlu0 %v4582_v13, %s4144_s29  ;;  %v722_v23 = vrot.slane %v4621_v28, 7  ;;  %v719_v6 = vsel %vm704_vm4, %v716_v5, %v718_v19  ;;  %v717_v10 = vsel %vm704_vm4, %v714_v32, %v716_v5 }
  0xe7   : > { %v3801_v26 = vpop.f32.mrf.mxu0  ;;  %v1035_v29 = vsel %vm1024_vm3, %v1032_v33, %v1034_v17  ;;  %v4650_v8 = vmul.f32 %v4543_v11, %v719_v6  ;;  %v4653_v36 = vmul.f32 %v4545_v12, %v717_v10  ;;  %v1037_v10 = vsel %vm1024_vm3, %v1034_v17, %v1036_v7 }
  0xe8   : > { %v720_v30 = vrot.slane %v4633_v20, 7  ;;  %v4645_v1 = vmax.f32 %v3801_v26, 0.0  ;;  %v1318_v26 = vmul.f32 %v4475_v39, %v1035_v29  ;;  %v4663_v11 = vpop.permute.xlu1 %914  ;;  %v1319_v17 = vmul.f32 %v4473_v38, %v1037_v10 }
  0xe9   : > { %1485 = vrot.lane.b32.xlu1 %v1317_v9, %s4145_s11  ;;  %v529_v13 = vpop.f32.mrf.mxu0  ;;  %5655 = vst [vmem:[#allocation8_spill] sm:$0xff] %v4650_v8 }
  0xea   : > { %v4655_v3 = vmax.f32 %v529_v13, 0.0  ;;  %1359 = vrot.lane.b32.xlu0 %v642_v27, %s4144_s29  ;;  %v726_v32 = vrot.slane %v4645_v1, 7  ;;  %v723_v33 = vsel %vm704_vm4, %v720_v30, %v722_v23  ;;  %v721_v9 = vsel %vm704_vm4, %v718_v19, %v720_v30  ;;  %v4669_v27 = vpop.permute.xlu0 %919 }
  0xeb   : > { %v3804_v5 = vpop.f32.mrf.mxu0  ;;  %v4673_v39 = vmul.f32 %v4560_v21, %v723_v33  ;;  %v4676_v19 = vmul.f32 %v4562_v22, %v721_v9  ;;  %v1040_v21 = vrot.slane %v4633_v20, 1  ;;  %v1039_v9 = vsel %vm1024_vm3, %v1036_v7, %v1038_v34 }
  0xec   : > { %v724_v12 = vrot.slane %v4655_v3, 7  ;;  %v4666_v6 = vmax.f32 %v3804_v5, 0.0  ;;  %v4698_v10 = vpop.permute.xlu1 %924 }
  0xed   : > { %1487 = vrot.lane.b32.xlu1 %v1318_v26, %s4145_s11  ;;  %v539_v13 = vpop.f32.mrf.mxu0  ;;  %5656 = vst [vmem:[#allocation9_spill] sm:$0xff] %v4673_v39 }
  0xee   : > { %v4678_v30 = vmax.f32 %v539_v13, 0.0  ;;  %1365 = vrot.lane.b32.xlu0 %v4598_v4, %s4144_s29  ;;  %v730_v29 = vrot.slane %v4666_v6, 7  ;;  %v727_v8 = vsel %vm704_vm4, %v724_v12, %v726_v32  ;;  %v725_v26 = vsel %vm704_vm4, %v722_v23, %v724_v12  ;;  %v930_v12 = vpop.permute.xlu0 %929 }
  0xef   : > { %v3807_v5 = vpop.f32.mrf.mxu0  ;;  %v4693_v13 = vmul.f32 %v4584_v14, %v727_v8  ;;  %v4696_v38 = vmul.f32 %v4586_v15, %v725_v26  ;;  %v1042_v15 = vrot.slane %v4621_v28, 1 }
  0xf0   : > { %v728_v33 = vrot.slane %v4678_v30, 7  ;;  %v4688_v22 = vmax.f32 %v3807_v5, 0.0 }
  0xf1   : > { %1489 = vrot.lane.b32.xlu1 %v1319_v17, %s4145_s11  ;;  %v549_v4 = vpop.f32.mrf.mxu0  ;;  %5657 = vst [vmem:[#allocation10_spill] sm:$0xff] %v4693_v13  ;;  %v1320_v17 = vmul.f32 %v4479_v41, %v1039_v9 }
  0xf2   : > { %v4700_v23 = vmax.f32 %v549_v4, 0.0  ;;  %1363 = vrot.lane.b32.xlu0 %v4612_v24, %s4144_s29  ;;  %v734_v5 = vrot.slane %v4688_v22, 7  ;;  %v731_v39 = vsel %vm704_vm4, %v728_v33, %v730_v29  ;;  %v729_v14 = vsel %vm704_vm4, %v726_v32, %v728_v33 }
  0xf3   : > { %v3810_v7 = vpop.f32.mrf.mxu0  ;;  %v1041_v4 = vsel %vm1024_vm3, %v1038_v34, %v1040_v21  ;;  %v4715_v13 = vmul.f32 %v4603_v35, %v731_v39  ;;  %v4718_v41 = vmul.f32 %v4600_v0, %v729_v14  ;;  %v1044_v35 = vrot.slane %v4655_v3, 1  ;;  %v935_v39 = vpop.permute.xlu1 %934 }
  0xf4   : > { %v732_v8 = vrot.slane %v4700_v23, 7  ;;  %v4710_v26 = vmax.f32 %v3810_v7, 0.0  ;;  %v1321_v7 = vmul.f32 %v4477_v40, %v1041_v4 }
  0xf5   : > { %1491 = vrot.lane.b32.xlu1 %v1320_v17, %s4145_s11  ;;  %v559_v24 = vpop.f32.mrf.mxu0  ;;  %5658 = vst [vmem:[#allocation11_spill] sm:$0xff] %v4715_v13  ;;  %5659 = vst [vmem:[#allocation12_spill] sm:$0xff] %v4718_v41  ;;  %v940_v13 = vpop.permute.xlu0 %939 }
  0xf6   : > { %v4720_v9 = vmax.f32 %v559_v24, 0.0  ;;  %1369 = vrot.lane.b32.xlu0 %v4621_v28, %s4144_s29  ;;  %v738_v32 = vrot.slane %v4710_v26, 7  ;;  %v735_v34 = vsel %vm704_vm4, %v732_v8, %v734_v5  ;;  %v733_v17 = vsel %vm704_vm4, %v730_v29, %v732_v8 }
  0xf7   : > { %v3813_v33 = vpop.f32.mrf.mxu0  ;;  %v1043_v24 = vsel %vm1024_vm3, %v1040_v21, %v1042_v15  ;;  %v4735_v41 = vmul.f32 %v4638_v18, %v735_v34  ;;  %v4738_v40 = vmul.f32 %v4631_v25, %v733_v17  ;;  %v1046_v18 = vrot.slane %v4645_v1, 1 }
  0xf8   : > { %v736_v0 = vrot.slane %v4720_v9, 7  ;;  %v4730_v14 = vmax.f32 %v3813_v33, 0.0  ;;  %v1322_v21 = vmul.f32 %v4483_v43, %v1043_v24  ;;  %v1045_v17 = vsel %vm1024_vm3, %v1042_v15, %v1044_v35  ;;  %v945_v24 = vpop.permute.xlu1 %944 }
  0xf9   : > { %1493 = vrot.lane.b32.xlu1 %v1321_v7, %s4145_s11  ;;  %v569_v28 = vpop.f32.mrf.mxu0  ;;  %5660 = vst [vmem:[#allocation13_spill] sm:$0xff] %v4735_v41  ;;  %v1323_v15 = vmul.f32 %v4481_v42, %v1045_v17 }
  0xfa   : > { %v4740_v29 = vmax.f32 %v569_v28, 0.0  ;;  %1367 = vrot.lane.b32.xlu0 %v4633_v20, %s4144_s29  ;;  %v742_v8 = vrot.slane %v4730_v14, 7  ;;  %v739_v33 = vsel %vm704_vm4, %v736_v0, %v738_v32  ;;  %v737_v7 = vsel %vm704_vm4, %v734_v5, %v736_v0  ;;  %v950_v5 = vpop.permute.xlu0 %949 }
  0xfb   : > { %v3816_v4 = vpop.f32.mrf.mxu0  ;;  %v4755_v28 = vmul.f32 %v4669_v27, %v739_v33  ;;  %v4758_v43 = vmul.f32 %v4663_v11, %v737_v7  ;;  %v1048_v33 = vrot.slane %v4678_v30, 1 }
  0xfc   : > { %v740_v34 = vrot.slane %v4740_v29, 7  ;;  %v4750_v25 = vmax.f32 %v3816_v4, 0.0 }
  0xfd   : > { %1495 = vrot.lane.b32.xlu1 %v1322_v21, %s4145_s11  ;;  %v579_v20 = vpop.f32.mrf.mxu0  ;;  %5661 = vst [vmem:[#allocation14_spill] sm:$0xff] %v4755_v28  ;;  %5662 = vst [vmem:[#allocation15_spill] sm:$0xff] %v4758_v43 }
  0xfe   : > { %v4760_v41 = vmax.f32 %v579_v20, 0.0  ;;  %1373 = vrot.lane.b32.xlu0 %v4645_v1, %s4144_s29  ;;  %v746_v0 = vrot.slane %v4750_v25, 7  ;;  %v743_v21 = vsel %vm704_vm4, %v740_v34, %v742_v8  ;;  %v741_v27 = vsel %vm704_vm4, %v738_v32, %v740_v34 }
  0xff   : > { %v3819_v4 = vpop.f32.mrf.mxu0  ;;  %v1047_v20 = vsel %vm1024_vm3, %v1044_v35, %v1046_v18  ;;  %v4774_v28 = vmul.f32 %v930_v12, %v743_v21  ;;  %v4777_v43 = vmul.f32 %v4698_v10, %v741_v27  ;;  %v1050_v12 = vrot.slane %v4666_v6, 1 }
 0x100   : > { %v744_v11 = vrot.slane %v4760_v41, 7  ;;  %v4770_v7 = vmax.f32 %v3819_v4, 0.0  ;;  %v1324_v17 = vmul.f32 %v4487_v45, %v1047_v20  ;;  %v1049_v27 = vsel %vm1024_vm3, %v1046_v18, %v1048_v33 }
 0x101   : > { %1497 = vrot.lane.b32.xlu1 %v1323_v15, %s4145_s11  ;;  %v589_v1 = vpop.f32.mrf.mxu0  ;;  %5663 = vst [vmem:[#allocation16_spill] sm:$0xff] %v4774_v28  ;;  %5664 = vst [vmem:[#allocation17_spill] sm:$0xff] %v4777_v43  ;;  %v955_v15 = vpop.permute.xlu1 %954 }
 0x102   : > { %v4779_v42 = vmax.f32 %v589_v1, 0.0  ;;  %1371 = vrot.lane.b32.xlu0 %v4655_v3, %s4144_s29  ;;  %v750_v32 = vrot.slane %v4770_v7, 7  ;;  %v747_v35 = vsel %vm704_vm4, %v744_v11, %v746_v0  ;;  %v745_v4 = vsel %vm704_vm4, %v742_v8, %v744_v11  ;;  %v960_v1 = vpop.permute.xlu0 %959 }
 0x103   : > { %v3822_v34 = vpop.f32.mrf.mxu0  ;;  %v4793_v28 = vmul.f32 %v940_v13, %v747_v35  ;;  %v4795_v45 = vmul.f32 %v935_v39, %v745_v4  ;;  %v1051_v35 = vsel %vm1024_vm3, %v1048_v33, %v1050_v12 }
 0x104   : > { %v748_v10 = vrot.slane %v4779_v42, 7  ;;  %v4789_v21 = vmax.f32 %v3822_v34, 0.0  ;;  %v1325_v34 = vmul.f32 %v4485_v44, %v1049_v27 }
 0x105   : > { %1499 = vrot.lane.b32.xlu1 %v1324_v17, %s4145_s11  ;;  %v599_v3 = vpop.f32.mrf.mxu0  ;;  %5665 = vst [vmem:[#allocation18_spill] sm:$0xff] %v4793_v28  ;;  %v1052_v17 = vrot.slane %v4700_v23, 1  ;;  %v965_v44 = vpop.permute.xlu1 %964  ;;  %v1326_v28 = vmul.f32 %v4491_v47, %v1051_v35 }
 0x106   : > { %v4797_v20 = vmax.f32 %v599_v3, 0.0  ;;  %1377 = vrot.lane.b32.xlu0 %v4666_v6, %s4144_s29  ;;  %v754_v8 = vrot.slane %v4789_v21, 7  ;;  %v751_v18 = vsel %vm704_vm4, %v748_v10, %v750_v32  ;;  %v749_v43 = vsel %vm704_vm4, %v746_v0, %v748_v10  ;;  %v970_v0 = vpop.permute.xlu0 %969 }
 0x107   : > { %v3825_v11 = vpop.f32.mrf.mxu0  ;;  %v4811_v4 = vmul.f32 %v950_v5, %v751_v18  ;;  %v4813_v3 = vmul.f32 %v945_v24, %v749_v43  ;;  %v1054_v5 = vrot.slane %v4688_v22, 1  ;;  %v1053_v18 = vsel %vm1024_vm3, %v1050_v12, %v1052_v17 }
 0x108   : > { %v752_v13 = vrot.slane %v4797_v20, 7  ;;  %v4807_v39 = vmax.f32 %v3825_v11, 0.0  ;;  %v1327_v35 = vmul.f32 %v4489_v46, %v1053_v18 }
 0x109   : > { %1501 = vrot.lane.b32.xlu1 %v1325_v34, %s4145_s11  ;;  %v609_v6 = vpop.f32.mrf.mxu0  ;;  %5666 = vst [vmem:[#allocation19_spill] sm:$0xff] %v4811_v4 }
 0x10a   : > { %v4815_v27 = vmax.f32 %v609_v6, 0.0  ;;  %1375 = vrot.lane.b32.xlu0 %v4678_v30, %s4144_s29  ;;  %v758_v10 = vrot.slane %v4807_v39, 7  ;;  %v755_v33 = vsel %vm704_vm4, %v752_v13, %v754_v8  ;;  %v753_v34 = vsel %vm704_vm4, %v750_v32, %v752_v13 }
 0x10b   : > { %v3828_v11 = vpop.f32.mrf.mxu0  ;;  %v4829_v6 = vmul.f32 %v960_v1, %v755_v33  ;;  %v4831_v4 = vmul.f32 %v955_v15, %v753_v34  ;;  %v975_v1 = vpop.permute.xlu1 %974  ;;  %v1055_v34 = vsel %vm1024_vm3, %v1052_v17, %v1054_v5 }
 0x10c   : > { %v756_v43 = vrot.slane %v4815_v27, 7  ;;  %v4825_v24 = vmax.f32 %v3828_v11, 0.0 }
 0x10d   : > { %1503 = vrot.lane.b32.xlu1 %v1326_v28, %s4145_s11  ;;  %v619_v30 = vpop.f32.mrf.mxu0  ;;  %5667 = vst [vmem:[#allocation20_spill] sm:$0xff] %v4829_v6  ;;  %v1056_v28 = vrot.slane %v4720_v9, 1 }
 0x10e   : > { %v4833_v47 = vmax.f32 %v619_v30, 0.0  ;;  %1381 = vrot.lane.b32.xlu0 %v4688_v22, %s4144_s29  ;;  %v762_v32 = vrot.slane %v4825_v24, 7  ;;  %v759_v11 = vsel %vm704_vm4, %v756_v43, %v758_v10  ;;  %v757_v12 = vsel %vm704_vm4, %v754_v8, %v756_v43  ;;  %v980_v30 = vpop.permute.xlu0 %979 }
 0x10f   : > { %v3831_v13 = vpop.f32.mrf.mxu0  ;;  %v4847_v6 = vmul.f32 %v970_v0, %v759_v11  ;;  %v4849_v46 = vmul.f32 %v965_v44, %v757_v12  ;;  %v1328_v43 = vmul.f32 %v4495_v49, %v1055_v34  ;;  %v1057_v44 = vsel %vm1024_vm3, %v1054_v5, %v1056_v28 }
 0x110   : > { %v760_v15 = vrot.slane %v4833_v47, 7  ;;  %v4843_v33 = vmax.f32 %v3831_v13, 0.0  ;;  %v5668_v12 = vrot.slane %v4553_v16, 1 }
 0x111   : > { %1505 = vrot.lane.b32.xlu1 %v1327_v35, %s4145_s11  ;;  %v629_v22 = vpop.f32.mrf.mxu0  ;;  %v1058_v35 = vrot.slane %v4710_v26, 1 }
 0x112   : > { %v1086_v18 = vrot.slane %v4843_v33, 1  ;;  %v4852_v8 = vmax.f32 %v629_v22, 0.0  ;;  %1379 = vrot.lane.b32.xlu0 %v4700_v23, %s4144_s29  ;;  %v763_v13 = vsel %vm704_vm4, %v760_v15, %v762_v32  ;;  %v761_v17 = vsel %vm704_vm4, %v758_v10, %v760_v15  ;;  %v985_v15 = vpop.permute.xlu1 %984  ;;  %v990_v34 = vpop.permute.xlu0 %989 }
 0x113   : > { %v671_v11 = vrot.slane %v4843_v33, 7  ;;  %v4871_v23 = vmul.f32 %v980_v30, %v763_v13  ;;  %v4873_v10 = vmul.f32 %v975_v1, %v761_v17  ;;  %v1329_v22 = vmul.f32 %v4493_v48, %v1057_v44 }
 0x114   : > { %v764_v0 = vrot.slane %v4852_v8, 7  ;;  %v4869_v49 = vsel %vm1024_vm3, %v1086_v18, %v5668_v12  ;;  %v1060_v30 = vrot.slane %v4740_v29, 1  ;;  %v1059_v1 = vsel %vm1024_vm3, %v1056_v28, %v1058_v35 }
 0x115   : > { %1507 = vrot.lane.b32.xlu1 %v1328_v43, %s4145_s11  ;;  %v1330_v48 = vmul.f32 %v4499_v51, %v1059_v1 }
 0x116   : > { %1385 = vrot.lane.b32.xlu0 %v4710_v26, %s4144_s29  ;;  %v765_v5 = vsel %vm704_vm4, %v762_v32, %v764_v0  ;;  %v766_v12 = vsel %vm704_vm4, %v764_v0, %v671_v11  ;;  %v4892_v26 = vld [vmem:[%s5644_s4 + $0x28] sm:$0xf]  ;;  %v1062_v32 = vrot.slane %v4730_v14, 1  ;;  %v1061_v28 = vsel %vm1024_vm3, %v1058_v35, %v1060_v30 }
 0x117   : > { %v4879_v43 = vmul.f32 %v985_v15, %v765_v5  ;;  %v4886_v13 = vmul.f32 %v990_v34, %v766_v12  ;;  %3936 = vmatprep.subr.msk.mxu1 %vm409_vm0, %v4892_v26  ;;  %v1331_v17 = vmul.f32 %v4497_v50, %v1061_v28  ;;  %v1064_v0 = vrot.slane %v4760_v41, 1 }
 0x118   : > { %v1066_v35 = vrot.slane %v4750_v25, 1  ;;  %v1082_v12 = vrot.slane %v4825_v24, 1 }
 0x119   : > { %1509 = vrot.lane.b32.xlu1 %v1329_v22, %s4145_s11  ;;  %v1065_v44 = vsel %vm1024_vm3, %v1062_v32, %v1064_v0 }
 0x11a   : > { %1383 = vrot.lane.b32.xlu0 %v4720_v9, %s4144_s29  ;;  %v1063_v9 = vsel %vm1024_vm3, %v1060_v30, %v1062_v32  ;;  %v1333_v50 = vmul.f32 %v4501_v52, %v1065_v44  ;;  %v1067_v15 = vsel %vm1024_vm3, %v1064_v0, %v1066_v35  ;;  %v1080_v30 = vrot.slane %v4833_v47, 1 }
 0x11b   : > { %v1332_v51 = vmul.f32 %v4503_v53, %v1063_v9  ;;  %v1334_v53 = vmul.f32 %v4507_v55, %v1067_v15 }
 0x11d   : > { %1511 = vrot.lane.b32.xlu1 %v1330_v48, %s4145_s11  ;;  %v1084_v48 = vrot.slane %v4852_v8, 1 }
 0x11e   : > { %1389 = vrot.lane.b32.xlu0 %v4730_v14, %s4144_s29  ;;  %v1068_v14 = vrot.slane %v4779_v42, 1 }
 0x11f   : > { %v1085_v9 = vsel %vm1024_vm3, %v1082_v12, %v1084_v48 }
 0x120   : > { %v1069_v5 = vsel %vm1024_vm3, %v1066_v35, %v1068_v14  ;;  %v5671_v35 = vld [vmem:[#allocation3_spill] sm:$0xff] }
 0x121   : > { %1513 = vrot.lane.b32.xlu1 %v1331_v17, %s4145_s11  ;;  %v1335_v52 = vmul.f32 %v4505_v54, %v1069_v5  ;;  %v1343_v44 = vmul.f32 %v5671_v35, %v1085_v9  ;;  %v5672_v5 = vld [vmem:[#allocation4_spill] sm:$0xff] }
 0x122   : > { %1387 = vrot.lane.b32.xlu0 %v4740_v29, %s4144_s29  ;;  %v1070_v29 = vrot.slane %v4770_v7, 1 }
 0x124   : > { %v1071_v34 = vsel %vm1024_vm3, %v1068_v14, %v1070_v29 }
 0x125   : > { %1515 = vrot.lane.b32.xlu1 %v1332_v51, %s4145_s11  ;;  %v1336_v55 = vmul.f32 %v4511_v57, %v1071_v34 }
 0x126   : > { %1393 = vrot.lane.b32.xlu0 %v4750_v25, %s4144_s29  ;;  %v1072_v25 = vrot.slane %v4797_v20, 1 }
 0x128   : > { %v1073_v22 = vsel %vm1024_vm3, %v1070_v29, %v1072_v25 }
 0x129   : > { %1517 = vrot.lane.b32.xlu1 %v1333_v50, %s4145_s11  ;;  %v1337_v54 = vmul.f32 %v4509_v56, %v1073_v22  ;;  %v5673_v22 = vld [vmem:[#allocation7_spill] sm:$0xff] }
 0x12a   : > { %1391 = vrot.lane.b32.xlu0 %v4760_v41, %s4144_s29  ;;  %v1074_v41 = vrot.slane %v4789_v21, 1 }
 0x12d   : > { %1519 = vrot.lane.b32.xlu1 %v1334_v53, %s4145_s11 }
 0x12e   : > { %1397 = vrot.lane.b32.xlu0 %v4770_v7, %s4144_s29  ;;  %v1075_v7 = vsel %vm1024_vm3, %v1072_v25, %v1074_v41 }
 0x12f   : > { %v1338_v57 = vmul.f32 %v4515_v59, %v1075_v7 }
 0x131   : > { %1521 = vrot.lane.b32.xlu1 %v1335_v52, %s4145_s11  ;;  %v1345_v52 = vmul.f32 %v5672_v5, %v4869_v49  ;;  %v3476_v49 = vld [vmem:[%s5644_s4 + $0x20] sm:$0xff] }
 0x132   : > { %1395 = vrot.lane.b32.xlu0 %v4779_v42, %s4144_s29  ;;  %v1076_v42 = vrot.slane %v4815_v27, 1 }
 0x134   : > { %v1077_v56 = vsel %vm1024_vm3, %v1074_v41, %v1076_v42 }
 0x135   : > { %1523 = vrot.lane.b32.xlu1 %v1336_v55, %s4145_s11 }
 0x136   : > { %1401 = vrot.lane.b32.xlu0 %v4789_v21, %s4144_s29  ;;  %v1078_v21 = vrot.slane %v4807_v39, 1 }
 0x138   : > { %v1079_v59 = vsel %vm1024_vm3, %v1076_v42, %v1078_v21 }
 0x139   : > { %1525 = vrot.lane.b32.xlu1 %v1337_v54, %s4145_s11 }
 0x13a   : > { %1399 = vrot.lane.b32.xlu0 %v4797_v20, %s4144_s29  ;;  %v1339_v20 = vmul.f32 %v4513_v58, %v1077_v56  ;;  %v1083_v58 = vsel %vm1024_vm3, %v1080_v30, %v1082_v12 }
 0x13d   : > { %1527 = vrot.lane.b32.xlu1 %v1338_v57, %s4145_s11 }
 0x13e   : > { %1405 = vrot.lane.b32.xlu0 %v4807_v39, %s4144_s29  ;;  %v1340_v39 = vmul.f32 %v4519_v61, %v1079_v59  ;;  %v1081_v61 = vsel %vm1024_vm3, %v1078_v21, %v1080_v30 }
 0x13f   : > { %v1341_v17 = vmul.f32 %v4517_v60, %v1081_v61 }
 0x141   : > { %1409 = vrot.lane.b32.xlu1 %v4825_v24, %s4144_s29 }
 0x142   : > { %1403 = vrot.lane.b32.xlu0 %v4815_v27, %s4144_s29  ;;  %v5669_v27 = vrot.slane %v4553_v16, 7 }
 0x144   : > { %v799_v24 = vsel %vm704_vm4, %v671_v11, %v5669_v27  ;;  %v5675_v27 = vld [vmem:[#allocation8_spill] sm:$0xff] }
 0x145   : > { %1529 = vrot.lane.b32.xlu1 %v1339_v20, %s4145_s11  ;;  %v992_v28 = vmul.f32 %v4523_v63, %v799_v24 }
 0x146   : > { %1407 = vrot.lane.b32.xlu0 %v4833_v47, %s4144_s29  ;;  %v1342_v47 = vmul.f32 %v4521_v62, %v1083_v58 }
 0x148   : > { %v1354_v1 = vpop.permute.xlu0 %1353 }
 0x149   : > { %1531 = vrot.lane.b32.xlu1 %v1340_v39, %s4145_s11 }
 0x14a   : > { %1411 = vrot.lane.b32.xlu0 %v4852_v8, %s4144_s29  ;;  %v1087_v8 = vsel %vm1024_vm3, %v1084_v48, %v1086_v18 }
 0x14b   : > { %v1344_v63 = vmul.f32 %v4527_v2, %v1087_v8 }
 0x14c   : > { %v1352_v32 = vpop.permute.xlu0 %1351 }
 0x14d   : > { %1413 = vrot.lane.b32.xlu1 %v4843_v33, %s4144_s29  ;;  %v1575_v16 = vsel %vm312_vm1, %v992_v28, %v1352_v32  ;;  %v5670_v33 = vld [vmem:[#allocation5_spill] sm:$0xff] }
 0x14e   : > { %1535 = vrot.lane.b32.xlu0 %v1342_v47, %s4145_s11  ;;  %v1576_v18 = vsel %vm312_vm1, %v5670_v33, %v1354_v1 }
 0x14f   : > { %v1480_v11 = vpop.permute.xlu1 %1479 }
 0x150   : > { %v1608_v62 = vsel %vm1607_vm5, %v1575_v16, %v1480_v11  ;;  %v1358_v0 = vpop.permute.xlu0 %1357 }
 0x151   : > { %1640 = vst.msk [vmem:[#allocation2 + $0x10] sm:$0xff] %vm1346_vm2, %v1608_v62  ;;  %1533 = vrot.lane.b32.xlu1 %v1341_v17, %s4145_s11  ;;  %v1578_v25 = vsel %vm312_vm1, %v4607_v31, %v1358_v0  ;;  %v5676_v62 = vld [vmem:[#allocation9_spill] sm:$0xff] }
 0x152   : > { %1539 = vrot.lane.b32.xlu0 %v1344_v63, %s4145_s11 }
 0x153   : > { %v1482_v51 = vpop.permute.xlu1 %1481 }
 0x154   : > { %v1609_v60 = vsel %vm1607_vm5, %v1576_v18, %v1482_v51  ;;  %v1356_v50 = vpop.permute.xlu0 %1355 }
 0x155   : > { %1641 = vst.msk [vmem:[#allocation2 + $0x18] sm:$0xff] %vm1346_vm2, %v1609_v60  ;;  %1537 = vrot.lane.b32.xlu1 %v1343_v44, %s4145_s11  ;;  %v1577_v2 = vsel %vm312_vm1, %v4610_v37, %v1356_v50  ;;  %v5677_v50 = vld [vmem:[#allocation10_spill] sm:$0xff] }
 0x157   : > { %v1484_v14 = vpop.permute.xlu1 %1483 }
 0x158   : > { %v1610_v15 = vsel %vm1607_vm5, %v1577_v2, %v1484_v14  ;;  %v1362_v53 = vpop.permute.xlu0 %1361  ;;  %v1674_v29 = vld [vmem:[#allocation2 + $0x10] sm:$0xff] }
 0x159   : > { %1642 = vst.msk [vmem:[#allocation2 + $0x20] sm:$0xff] %vm1346_vm2, %v1610_v15  ;;  %3836 = vmatprep.mubr.msk.f32.mxu1 %vm1346_vm2, %v1674_v29  ;;  %3891 = vmatprep.mubr.msk.f32.mxu0 %vm1346_vm2, %v1674_v29  ;;  %v5678_v29 = vld [vmem:[#allocation12_spill] sm:$0xff] }
 0x15a   : > { %1541 = vrot.lane.b32.xlu1 %v1345_v52, %s4145_s11 }
 0x15b   : > { %v1486_v37 = vpop.permute.xlu1 %1485 }
 0x15c   : > { %v1611_v34 = vsel %vm1607_vm5, %v1578_v25, %v1486_v37  ;;  %v1360_v55 = vpop.permute.xlu0 %1359  ;;  %v1675_v41 = vld [vmem:[#allocation2 + $0x18] sm:$0xff] }
 0x15d   : > { %1643 = vst.msk [vmem:[#allocation2 + $0x28] sm:$0xff] %vm1346_vm2, %v1611_v34  ;;  %3837 = vmatmul.mubr.msk.f32.vlgmr.msra.gmra.mxu1 %vm1346_vm2, %v1675_v41  ;;  %3892 = vmatmul.mubr.msk.f32.gmra.mxu0 %vm1346_vm2, %v1675_v41  ;;  %v1579_v31 = vsel %vm312_vm1, %v5673_v22, %v1360_v55  ;;  %v5679_v55 = vld [vmem:[#allocation11_spill] sm:$0xff] }
 0x15e   : > { %3937 = vmatpush3.msk.msra.mxu1 %vm409_vm0, %v4892_v26  ;;  %v5674_v26 = vld [vmem:[#allocation6_spill] sm:$0xff] }
 0x15f   : > { %v1488_v54 = vpop.permute.xlu1 %1487  ;;  %3938 = vmatprep.subr.mxu1 %v3476_v49  ;;  %v1580_v21 = vsel %vm312_vm1, %v5674_v26, %v1362_v53 }
 0x160   : > { %v1612_v7 = vsel %vm1607_vm5, %v1579_v31, %v1488_v54  ;;  %v1366_v57 = vpop.permute.xlu0 %1365  ;;  %v5020_v42 = vld [vmem:[#allocation2 + $0x20] sm:$0xff]  ;;  %3939 = vmatpush3.msra.mxu1 %v3476_v49 }
 0x161   : > { %1644 = vst.msk [vmem:[#allocation2 + $0x30] sm:$0xff] %vm1346_vm2, %v1612_v7  ;;  %3839 = vmatprep.mubr.msk.f32.mxu1 %vm1346_vm2, %v5020_v42  ;;  %3894 = vmatprep.mubr.msk.f32.mxu0 %vm1346_vm2, %v5020_v42  ;;  %v1582_v24 = vsel %vm312_vm1, %v5675_v27, %v1366_v57 }
 0x163   : > { %v1490_v56 = vpop.permute.xlu1 %1489 }
 0x164   : > { %v1613_v20 = vsel %vm1607_vm5, %v1580_v21, %v1490_v56  ;;  %v1364_v59 = vpop.permute.xlu0 %1363  ;;  %v5030_v12 = vld [vmem:[#allocation2 + $0x28] sm:$0xff] }
 0x165   : > { %1645 = vst.msk [vmem:[#allocation2 + $0x38] sm:$0xff] %vm1346_vm2, %v1613_v20  ;;  %3840 = vmatmul.mubr.msk.f32.gmra.mxu1 %vm1346_vm2, %v5030_v12  ;;  %3895 = vmatmul.mubr.msk.f32.gmra.mxu0 %vm1346_vm2, %v5030_v12  ;;  %v1581_v30 = vsel %vm312_vm1, %v4653_v36, %v1364_v59  ;;  %v5680_v20 = vld [vmem:[#allocation13_spill] sm:$0xff] }
 0x167   : > { %v1492_v39 = vpop.permute.xlu1 %1491 }
 0x168   : > { %v1614_v1 = vsel %vm1607_vm5, %v1581_v30, %v1492_v39  ;;  %v1370_v48 = vpop.permute.xlu0 %1369  ;;  %v5040_v58 = vld [vmem:[#allocation2 + $0x30] sm:$0xff] }
 0x169   : > { %1646 = vst.msk [vmem:[#allocation2 + $0x40] sm:$0xff] %vm1346_vm2, %v1614_v1  ;;  %3842 = vmatprep.mubr.msk.f32.mxu1 %vm1346_vm2, %v5040_v58  ;;  %3897 = vmatprep.mubr.msk.f32.mxu0 %vm1346_vm2, %v5040_v58  ;;  %v1584_v0 = vsel %vm312_vm1, %v5676_v62, %v1370_v48  ;;  %v5681_v48 = vld [vmem:[#allocation15_spill] sm:$0xff] }
 0x16b   : > { %v1494_v32 = vpop.permute.xlu1 %1493 }
 0x16c   : > { %v1615_v36 = vsel %vm1607_vm5, %v1582_v24, %v1494_v32  ;;  %v1368_v47 = vpop.permute.xlu0 %1367  ;;  %v5050_v61 = vld [vmem:[#allocation2 + $0x38] sm:$0xff] }
 0x16d   : > { %1647 = vst.msk [vmem:[#allocation2 + $0x48] sm:$0xff] %vm1346_vm2, %v1615_v36  ;;  %3843 = vmatmul.mubr.msk.f32.gmra.mxu1 %vm1346_vm2, %v5050_v61  ;;  %3898 = vmatmul.mubr.msk.f32.gmra.mxu0 %vm1346_vm2, %v5050_v61  ;;  %v1583_v28 = vsel %vm312_vm1, %v4676_v19, %v1368_v47 }
 0x16f   : > { %v1496_v8 = vpop.permute.xlu1 %1495 }
 0x170   : > { %v1616_v16 = vsel %vm1607_vm5, %v1583_v28, %v1496_v8  ;;  %v1374_v11 = vpop.permute.xlu0 %1373  ;;  %v5060_v17 = vld [vmem:[#allocation2 + $0x40] sm:$0xff]  ;;  %v5682_v28 = vld [vmem:[#allocation14_spill] sm:$0xff] }
 0x171   : > { %1648 = vst.msk [vmem:[#allocation2 + $0x50] sm:$0xff] %vm1346_vm2, %v1616_v16  ;;  %3845 = vmatprep.mubr.msk.f32.mxu1 %vm1346_vm2, %v5060_v17  ;;  %3900 = vmatprep.mubr.msk.f32.mxu0 %vm1346_vm2, %v5060_v17  ;;  %v1586_v2 = vsel %vm312_vm1, %v5677_v50, %v1374_v11 }
 0x173   : > { %v1498_v63 = vpop.permute.xlu1 %1497 }
 0x174   : > { %v1617_v19 = vsel %vm1607_vm5, %v1584_v0, %v1498_v63  ;;  %v1372_v9 = vpop.permute.xlu0 %1371  ;;  %v5070_v33 = vld [vmem:[#allocation2 + $0x48] sm:$0xff]  ;;  %v5683_v63 = vld [vmem:[#allocation17_spill] sm:$0xff] }
 0x175   : > { %1649 = vst.msk [vmem:[#allocation2 + $0x58] sm:$0xff] %vm1346_vm2, %v1617_v19  ;;  %3846 = vmatmul.mubr.msk.f32.gmra.mxu1 %vm1346_vm2, %v5070_v33  ;;  %3901 = vmatmul.mubr.msk.f32.gmra.mxu0 %vm1346_vm2, %v5070_v33  ;;  %v1585_v18 = vsel %vm312_vm1, %v4696_v38, %v1372_v9 }
 0x177   : > { %v1500_v51 = vpop.permute.xlu1 %1499 }
 0x178   : > { %v1618_v35 = vsel %vm1607_vm5, %v1585_v18, %v1500_v51  ;;  %v1378_v44 = vpop.permute.xlu0 %1377  ;;  %v5080_v60 = vld [vmem:[#allocation2 + $0x50] sm:$0xff] }
 0x179   : > { %1650 = vst.msk [vmem:[#allocation2 + $0x60] sm:$0xff] %vm1346_vm2, %v1618_v35  ;;  %3848 = vmatprep.mubr.msk.f32.mxu1 %vm1346_vm2, %v5080_v60  ;;  %3903 = vmatprep.mubr.msk.f32.mxu0 %vm1346_vm2, %v5080_v60  ;;  %v1588_v41 = vsel %vm312_vm1, %v5679_v55, %v1378_v44  ;;  %v5684_v44 = vld [vmem:[#allocation16_spill] sm:$0xff]  ;;  %v5685_v55 = vld [vmem:[#allocation18_spill] sm:$0xff] }
 0x17b   : > { %v1502_v14 = vpop.permute.xlu1 %1501 }
 0x17c   : > { %v1619_v38 = vsel %vm1607_vm5, %v1586_v2, %v1502_v14  ;;  %v1376_v15 = vpop.permute.xlu0 %1375  ;;  %v5090_v53 = vld [vmem:[#allocation2 + $0x58] sm:$0xff] }
 0x17d   : > { %1651 = vst.msk [vmem:[#allocation2 + $0x68] sm:$0xff] %vm1346_vm2, %v1619_v38  ;;  %3849 = vmatmul.mubr.msk.f32.gmra.mxu1 %vm1346_vm2, %v5090_v53  ;;  %3904 = vmatmul.mubr.msk.f32.gmra.mxu0 %vm1346_vm2, %v5090_v53  ;;  %v1587_v5 = vsel %vm312_vm1, %v5678_v29, %v1376_v15 }
 0x17f   : > { %v1504_v52 = vpop.permute.xlu1 %1503 }
 0x180   : > { %v1620_v25 = vsel %vm1607_vm5, %v1587_v5, %v1504_v52  ;;  %v1382_v37 = vpop.permute.xlu0 %1381  ;;  %v5100_v34 = vld [vmem:[#allocation2 + $0x60] sm:$0xff] }
 0x181   : > { %1652 = vst.msk [vmem:[#allocation2 + $0x70] sm:$0xff] %vm1346_vm2, %v1620_v25  ;;  %3851 = vmatprep.mubr.msk.f32.mxu1 %vm1346_vm2, %v5100_v34  ;;  %3906 = vmatprep.mubr.msk.f32.mxu0 %vm1346_vm2, %v5100_v34  ;;  %v1590_v59 = vsel %vm312_vm1, %v5680_v20, %v1382_v37 }
 0x183   : > { %v1506_v49 = vpop.permute.xlu1 %1505 }
 0x184   : > { %v1621_v22 = vsel %vm1607_vm5, %v1588_v41, %v1506_v49  ;;  %v1380_v31 = vpop.permute.xlu0 %1379  ;;  %v5110_v54 = vld [vmem:[#allocation2 + $0x68] sm:$0xff] }
 0x185   : > { %1653 = vst.msk [vmem:[#allocation2 + $0x78] sm:$0xff] %vm1346_vm2, %v1621_v22  ;;  %3852 = vmatmul.mubr.msk.f32.gmra.mxu1 %vm1346_vm2, %v5110_v54  ;;  %3907 = vmatmul.mubr.msk.f32.gmra.mxu0 %vm1346_vm2, %v5110_v54  ;;  %v1589_v7 = vsel %vm312_vm1, %v4738_v40, %v1380_v31 }
 0x187   : > { %v1508_v57 = vpop.permute.xlu1 %1507 }
 0x188   : > { %v1622_v26 = vsel %vm1607_vm5, %v1589_v7, %v1508_v57  ;;  %v1386_v21 = vpop.permute.xlu0 %1385  ;;  %v5120_v56 = vld [vmem:[#allocation2 + $0x70] sm:$0xff] }
 0x189   : > { %1654 = vst.msk [vmem:[#allocation2 + $0x80] sm:$0xff] %vm1346_vm2, %v1622_v26  ;;  %3854 = vmatprep.mubr.msk.f32.mxu1 %vm1346_vm2, %v5120_v56  ;;  %3909 = vmatprep.mubr.msk.f32.mxu0 %vm1346_vm2, %v5120_v56  ;;  %v1592_v8 = vsel %vm312_vm1, %v5682_v28, %v1386_v21 }
 0x18b   : > { %v1510_v30 = vpop.permute.xlu1 %1509 }
 0x18c   : > { %v1623_v40 = vsel %vm1607_vm5, %v1590_v59, %v1510_v30  ;;  %v1384_v39 = vpop.permute.xlu0 %1383  ;;  %v5130_v1 = vld [vmem:[#allocation2 + $0x78] sm:$0xff]  ;;  %v5686_v59 = vld [vmem:[#allocation19_spill] sm:$0xff] }
 0x18d   : > { %1655 = vst.msk [vmem:[#allocation2 + $0x88] sm:$0xff] %vm1346_vm2, %v1623_v40  ;;  %3855 = vmatmul.mubr.msk.f32.gmra.mxu1 %vm1346_vm2, %v5130_v1  ;;  %3910 = vmatmul.mubr.msk.f32.gmra.mxu0 %vm1346_vm2, %v5130_v1  ;;  %v1591_v27 = vsel %vm312_vm1, %v5681_v48, %v1384_v39 }
 0x18f   : > { %v1512_v24 = vpop.permute.xlu1 %1511 }
 0x190   : > { %v1624_v32 = vsel %vm1607_vm5, %v1591_v27, %v1512_v24  ;;  %v1390_v36 = vpop.permute.xlu0 %1389  ;;  %v5140_v47 = vld [vmem:[#allocation2 + $0x80] sm:$0xff] }
 0x191   : > { %1656 = vst.msk [vmem:[#allocation2 + $0x90] sm:$0xff] %vm1346_vm2, %v1624_v32  ;;  %3857 = vmatprep.mubr.msk.f32.mxu1 %vm1346_vm2, %v5140_v47  ;;  %3912 = vmatprep.mubr.msk.f32.mxu0 %vm1346_vm2, %v5140_v47  ;;  %v1594_v50 = vsel %vm312_vm1, %v5684_v44, %v1390_v36 }
 0x193   : > { %v1514_v16 = vpop.permute.xlu1 %1513 }
 0x194   : > { %v1625_v11 = vsel %vm1607_vm5, %v1592_v8, %v1514_v16  ;;  %v1388_v62 = vpop.permute.xlu0 %1387  ;;  %v5150_v0 = vld [vmem:[#allocation2 + $0x88] sm:$0xff] }
 0x195   : > { %1657 = vst.msk [vmem:[#allocation2 + $0x98] sm:$0xff] %vm1346_vm2, %v1625_v11  ;;  %3858 = vmatmul.mubr.msk.f32.gmra.mxu1 %vm1346_vm2, %v5150_v0  ;;  %3913 = vmatmul.mubr.msk.f32.gmra.mxu0 %vm1346_vm2, %v5150_v0  ;;  %v1593_v19 = vsel %vm312_vm1, %v5683_v63, %v1388_v62 }
 0x197   : > { %v1516_v9 = vpop.permute.xlu1 %1515 }
 0x198   : > { %v1626_v18 = vsel %vm1607_vm5, %v1593_v19, %v1516_v9  ;;  %v1394_v51 = vpop.permute.xlu0 %1393  ;;  %v5160_v35 = vld [vmem:[#allocation2 + $0x90] sm:$0xff] }
 0x199   : > { %1658 = vst.msk [vmem:[#allocation2 + $0xa0] sm:$0xff] %vm1346_vm2, %v1626_v18  ;;  %3860 = vmatprep.mubr.msk.f32.mxu1 %vm1346_vm2, %v5160_v35  ;;  %3915 = vmatprep.mubr.msk.f32.mxu0 %vm1346_vm2, %v5160_v35  ;;  %v1596_v41 = vsel %vm312_vm1, %v5685_v55, %v1394_v51 }
 0x19b   : > { %v1518_v2 = vpop.permute.xlu1 %1517 }
 0x19c   : > { %v1627_v14 = vsel %vm1607_vm5, %v1594_v50, %v1518_v2  ;;  %v1392_v38 = vpop.permute.xlu0 %1391  ;;  %v5170_v15 = vld [vmem:[#allocation2 + $0x98] sm:$0xff] }
 0x19d   : > { %1659 = vst.msk [vmem:[#allocation2 + $0xa8] sm:$0xff] %vm1346_vm2, %v1627_v14  ;;  %3861 = vmatmul.mubr.msk.f32.gmra.mxu1 %vm1346_vm2, %v5170_v15  ;;  %3916 = vmatmul.mubr.msk.f32.gmra.mxu0 %vm1346_vm2, %v5170_v15  ;;  %v1595_v29 = vsel %vm312_vm1, %v4795_v45, %v1392_v38 }
 0x19f   : > { %v1520_v5 = vpop.permute.xlu1 %1519 }
 0x1a0   : > { %v1628_v52 = vsel %vm1607_vm5, %v1595_v29, %v1520_v5  ;;  %v1398_v25 = vpop.permute.xlu0 %1397  ;;  %v5180_v37 = vld [vmem:[#allocation2 + $0xa0] sm:$0xff] }
 0x1a1   : > { %1660 = vst.msk [vmem:[#allocation2 + $0xb0] sm:$0xff] %vm1346_vm2, %v1628_v52  ;;  %3863 = vmatprep.mubr.msk.f32.mxu1 %vm1346_vm2, %v5180_v37  ;;  %3918 = vmatprep.mubr.msk.f32.mxu0 %vm1346_vm2, %v5180_v37  ;;  %v1598_v30 = vsel %vm312_vm1, %v5686_v59, %v1398_v25 }
 0x1a3   : > { %v1522_v49 = vpop.permute.xlu1 %1521 }
 0x1a4   : > { %v1629_v45 = vsel %vm1607_vm5, %v1596_v41, %v1522_v49  ;;  %v1396_v22 = vpop.permute.xlu0 %1395  ;;  %v5190_v31 = vld [vmem:[#allocation2 + $0xa8] sm:$0xff] }
 0x1a5   : > { %1661 = vst.msk [vmem:[#allocation2 + $0xb8] sm:$0xff] %vm1346_vm2, %v1629_v45  ;;  %3864 = vmatmul.mubr.msk.f32.gmra.mxu1 %vm1346_vm2, %v5190_v31  ;;  %3919 = vmatmul.mubr.msk.f32.gmra.mxu0 %vm1346_vm2, %v5190_v31  ;;  %v1597_v7 = vsel %vm312_vm1, %v4813_v3, %v1396_v22 }
 0x1a7   : > { %v1524_v57 = vpop.permute.xlu1 %1523 }
 0x1a8   : > { %v1630_v26 = vsel %vm1607_vm5, %v1597_v7, %v1524_v57  ;;  %v1402_v21 = vpop.permute.xlu0 %1401  ;;  %v5200_v20 = vld [vmem:[#allocation2 + $0xb0] sm:$0xff] }
 0x1a9   : > { %1662 = vst.msk [vmem:[#allocation2 + $0xc0] sm:$0xff] %vm1346_vm2, %v1630_v26  ;;  %3866 = vmatprep.mubr.msk.f32.mxu1 %vm1346_vm2, %v5200_v20  ;;  %3921 = vmatprep.mubr.msk.f32.mxu0 %vm1346_vm2, %v5200_v20 }
 0x1ab   : > { %v1526_v40 = vpop.permute.xlu1 %1525 }
 0x1ac   : > { %v1631_v3 = vsel %vm1607_vm5, %v1598_v30, %v1526_v40  ;;  %v1400_v39 = vpop.permute.xlu0 %1399  ;;  %v5210_v48 = vld [vmem:[#allocation2 + $0xb8] sm:$0xff]  ;;  %v4102_v30 = vld [vmem:[%s4219_s16] sm:$0xff] }
 0x1ad   : > { %1663 = vst.msk [vmem:[#allocation2 + $0xc8] sm:$0xff] %vm1346_vm2, %v1631_v3  ;;  %3867 = vmatmul.mubr.msk.f32.gmra.mxu1 %vm1346_vm2, %v5210_v48  ;;  %3922 = vmatmul.mubr.msk.f32.gmra.mxu0 %vm1346_vm2, %v5210_v48  ;;  %v1599_v27 = vsel %vm312_vm1, %v4831_v4, %v1400_v39  ;;  %v5687_v4 = vld [vmem:[#allocation20_spill] sm:$0xff]  ;;  %v2693_v3 = vld [vmem:[%s5646_s6] sm:$0xf]  ;;  %v4121_v39 = vld [vmem:[%s4219_s16 + $0x98] sm:$0xff] }
 0x1ae   : > { %v1600_v62 = vsel %vm312_vm1, %v5687_v4, %v1402_v21  ;;  %3988 = vmatprep.subr.msk.mxu0 %vm409_vm0, %v2693_v3  ;;  %v4129_v4 = vld [vmem:[%s4219_s16 + $0xd8] sm:$0xff] }
 0x1af   : > { %v1528_v24 = vpop.permute.xlu1 %1527  ;;  %3989 = vmatpush3.msk.msra.mxu0 %vm409_vm0, %v2693_v3 }
 0x1b0   : > { %v1632_v32 = vsel %vm1607_vm5, %v1599_v27, %v1528_v24  ;;  %v1406_v36 = vpop.permute.xlu0 %1405  ;;  %v5220_v28 = vld [vmem:[#allocation2 + $0xc0] sm:$0xff]  ;;  %v4123_v27 = vld [vmem:[%s4219_s16 + $0xa8] sm:$0xff]  ;;  %v4124_v24 = vld [vmem:[%s4219_s16 + $0xb0] sm:$0xff] }
 0x1b1   : > { %1664 = vst.msk [vmem:[#allocation2 + $0xd0] sm:$0xff] %vm1346_vm2, %v1632_v32  ;;  %3869 = vmatprep.mubr.msk.f32.mxu1 %vm1346_vm2, %v5220_v28  ;;  %3924 = vmatprep.mubr.msk.f32.mxu0 %vm1346_vm2, %v5220_v28  ;;  %v2299_v32 = vld [vmem:[#allocation2 + $0x110] sm:$0xff] }
 0x1b3   : > { %v1410_v8 = vpop.permute.xlu1 %1409 }
 0x1b4   : > { %v1404_v16 = vpop.permute.xlu0 %1403  ;;  %v5227_v11 = vld [vmem:[#allocation2 + $0xc8] sm:$0xff] }
 0x1b5   : > { %3870 = vmatmul.mubr.msk.f32.gmra.mxu1 %vm1346_vm2, %v5227_v11  ;;  %3925 = vmatmul.mubr.msk.f32.gmra.mxu0 %vm1346_vm2, %v5227_v11  ;;  %v1601_v51 = vsel %vm312_vm1, %v4849_v46, %v1404_v16  ;;  %v1602_v46 = vsel %vm312_vm1, %v4847_v6, %v1406_v36  ;;  %v1604_v6 = vsel %vm312_vm1, %v4871_v23, %v1410_v8  ;;  %v4125_v36 = vld [vmem:[%s4219_s16 + $0xb8] sm:$0xff]  ;;  %v4127_v16 = vld [vmem:[%s4219_s16 + $0xc8] sm:$0xff] }
 0x1b6   : > { %v2300_v8 = vld [vmem:[#allocation2 + $0x118] sm:$0xff] }
 0x1b7   : > { %v1530_v63 = vpop.permute.xlu1 %1529 }
 0x1b8   : > { %v1633_v19 = vsel %vm1607_vm5, %v1600_v62, %v1530_v63  ;;  %v1408_v9 = vpop.permute.xlu0 %1407  ;;  %v5236_v18 = vld [vmem:[#allocation2 + $0xd0] sm:$0xff]  ;;  %v4130_v62 = vld [vmem:[%s4219_s16 + $0xe0] sm:$0xff]  ;;  %v4131_v63 = vld [vmem:[%s4219_s16 + $0xe8] sm:$0xff] }
 0x1b9   : > { %1665 = vst.msk [vmem:[#allocation2 + $0xd8] sm:$0xff] %vm1346_vm2, %v1633_v19  ;;  %3872 = vmatprep.mubr.msk.f32.mxu1 %vm1346_vm2, %v5236_v18  ;;  %3927 = vmatprep.mubr.msk.f32.mxu0 %vm1346_vm2, %v5236_v18  ;;  %v1603_v38 = vsel %vm312_vm1, %v4873_v10, %v1408_v9  ;;  %v4132_v19 = vld [vmem:[%s4219_s16 + $0xf0] sm:$0xff]  ;;  %v4133_v9 = vld [vmem:[%s4219_s16 + $0xf8] sm:$0xff] }
 0x1bb   : > { %v1532_v44 = vpop.permute.xlu1 %1531 }
 0x1bc   : > { %v1634_v50 = vsel %vm1607_vm5, %v1601_v51, %v1532_v44  ;;  %v1412_v2 = vpop.permute.xlu0 %1411 }
 0x1bd   : > { %1666 = vst.msk [vmem:[#allocation2 + $0xe0] sm:$0xff] %vm1346_vm2, %v1634_v50  ;;  %v1605_v10 = vsel %vm312_vm1, %v4879_v43, %v1412_v2 }
 0x1bf   : > { %v1414_v14 = vpop.permute.xlu1 %1413 }
 0x1c0   : > { %v1536_v29 = vpop.permute.xlu0 %1535  ;;  %v5249_v5 = vld [vmem:[#allocation2 + $0xd8] sm:$0xff]  ;;  %v1606_v7 = vsel %vm312_vm1, %v4886_v13, %v1414_v14 }
 0x1c1   : > { %v1636_v52 = vsel %vm1607_vm5, %v1603_v38, %v1536_v29  ;;  %3873 = vmatmul.mubr.msk.f32.gmra.mxu1 %vm1346_vm2, %v5249_v5  ;;  %3928 = vmatmul.mubr.msk.f32.gmra.mxu0 %vm1346_vm2, %v5249_v5 }
 0x1c2   : > { %1668 = vst.msk [vmem:[#allocation2 + $0xf0] sm:$0xff] %vm1346_vm2, %v1636_v52 }
 0x1c3   : > { %v1534_v25 = vpop.permute.xlu1 %1533 }
 0x1c4   : > { %v1635_v55 = vsel %vm1607_vm5, %v1602_v46, %v1534_v25  ;;  %v1540_v41 = vpop.permute.xlu0 %1539  ;;  %v5262_v49 = vld [vmem:[#allocation2 + $0xe0] sm:$0xff] }
 0x1c5   : > { %1667 = vst.msk [vmem:[#allocation2 + $0xe8] sm:$0xff] %vm1346_vm2, %v1635_v55  ;;  %v1638_v45 = vsel %vm1607_vm5, %v1605_v10, %v1540_v41  ;;  %3875 = vmatprep.mubr.msk.f32.mxu1 %vm1346_vm2, %v5262_v49  ;;  %3930 = vmatprep.mubr.msk.f32.mxu0 %vm1346_vm2, %v5262_v49 }
 0x1c6   : > { %1670 = vst.msk [vmem:[#allocation2 + $0x100] sm:$0xff] %vm1346_vm2, %v1638_v45 }
 0x1c7   : > { %v1538_v43 = vpop.permute.xlu1 %1537 }
 0x1c8   : > { %v1637_v22 = vsel %vm1607_vm5, %v1604_v6, %v1538_v43  ;;  %v3890_v43 = vpop.f32.mrf.mxu0 }
 0x1c9   : > { %1669 = vst.msk [vmem:[#allocation2 + $0xf8] sm:$0xff] %vm1346_vm2, %v1637_v22  ;;  %v5284_v23 = vld [vmem:[#allocation2 + $0xf0] sm:$0xff] }
 0x1cc   : > { %v1542_v57 = vpop.permute.xlu1 %1541  ;;  %v5277_v26 = vld [vmem:[#allocation2 + $0xe8] sm:$0xff] }
 0x1cd   : > { %v1639_v21 = vsel %vm1607_vm5, %v1606_v7, %v1542_v57  ;;  %3876 = vmatmul.mubr.msk.f32.gmra.mxu1 %vm1346_vm2, %v5277_v26  ;;  %3931 = vmatmul.mubr.msk.f32.gmra.mxu0 %vm1346_vm2, %v5277_v26  ;;  %v5297_v59 = vld [vmem:[#allocation2 + $0x100] sm:$0xff]  ;;  %v2110_v7 = vpop.f32.mrf.mxu0 }
 0x1ce   : > { %1671 = vst.msk [vmem:[#allocation2 + $0x108] sm:$0xff] %vm1346_vm2, %v1639_v21  ;;  %3878 = vmatprep.mubr.msk.f32.mxu1 %vm1346_vm2, %v5284_v23  ;;  %3933 = vmatprep.mubr.msk.f32.mxu0 %vm1346_vm2, %v5284_v23 }
 0x1d0   : > { %v5291_v13 = vld [vmem:[#allocation2 + $0xf8] sm:$0xff] }
 0x1d1   : > { %3879 = vmatmul.mubr.msk.f32.gmra.mxu1 %vm1346_vm2, %v5291_v13  ;;  %3934 = vmatmul.mubr.msk.f32.gmra.mxu0 %vm1346_vm2, %v5291_v13 }
 0x1d2   : > { %3881 = vmatprep.mubr.msk.f32.mxu1 %vm1346_vm2, %v5297_v59  ;;  %3990 = vmatprep.mubr.msk.f32.mxu0 %vm312_vm1, %v4102_v30 }
 0x1d5   : > { %v5303_v40 = vld [vmem:[#allocation2 + $0x108] sm:$0xff] }
 0x1d6   : > { %3882 = vmatmul.mubr.msk.f32.gmra.mxu1 %vm1346_vm2, %v5303_v40 }
 0x1d7   : > { %3940 = vmatprep.mubr.msk.f32.mxu1 %vm1346_vm2, %v5020_v42  ;;  %v2692_v42 = vld [vmem:[%s5645_s5] sm:$0xf] }
 0x1d8   : > { %4038 = vmatprep.subr.msk.mxu1 %vm409_vm0, %v2692_v42 }
 0x1da   : > { %3941 = vmatmul.mubr.msk.f32.vlgmr.msra.gmra.mxu1 %vm1346_vm2, %v5030_v12  ;;  %v4103_v12 = vld [vmem:[%s4219_s16 + $0x8] sm:$0xff] }
 0x1db   : > { %3943 = vmatprep.mubr.msk.f32.mxu1 %vm1346_vm2, %v5040_v58  ;;  %4039 = vmatpush3.msk.msra.mxu1 %vm409_vm0, %v2692_v42  ;;  %v4104_v58 = vld [vmem:[%s4219_s16 + $0x10] sm:$0xff] }
 0x1dc   : > { %3991 = vmatmul.mubr.msk.f32.vlgmr.msra.gmra.mxu0 %vm312_vm1, %v4103_v12 }
 0x1dd   : > { %3993 = vmatprep.mubr.msk.f32.mxu0 %vm312_vm1, %v4104_v58 }
 0x1de   : > { %3944 = vmatmul.mubr.msk.f32.gmra.mxu1 %vm1346_vm2, %v5050_v61  ;;  %v4105_v61 = vld [vmem:[%s4219_s16 + $0x18] sm:$0xff] }
 0x1df   : > { %3946 = vmatprep.mubr.msk.f32.mxu1 %vm1346_vm2, %v5060_v17  ;;  %v4106_v17 = vld [vmem:[%s4219_s16 + $0x20] sm:$0xff] }
 0x1e0   : > { %3994 = vmatmul.mubr.msk.f32.gmra.mxu0 %vm312_vm1, %v4105_v61 }
 0x1e1   : > { %3996 = vmatprep.mubr.msk.f32.mxu0 %vm312_vm1, %v4106_v17 }
 0x1e2   : > { %3947 = vmatmul.mubr.msk.f32.gmra.mxu1 %vm1346_vm2, %v5070_v33  ;;  %v4107_v33 = vld [vmem:[%s4219_s16 + $0x28] sm:$0xff] }
 0x1e3   : > { %3949 = vmatprep.mubr.msk.f32.mxu1 %vm1346_vm2, %v5080_v60  ;;  %v4108_v60 = vld [vmem:[%s4219_s16 + $0x30] sm:$0xff] }
 0x1e4   : > { %3997 = vmatmul.mubr.msk.f32.gmra.mxu0 %vm312_vm1, %v4107_v33 }
 0x1e5   : > { %3999 = vmatprep.mubr.msk.f32.mxu0 %vm312_vm1, %v4108_v60 }
 0x1e6   : > { %3950 = vmatmul.mubr.msk.f32.gmra.mxu1 %vm1346_vm2, %v5090_v53  ;;  %v4109_v53 = vld [vmem:[%s4219_s16 + $0x38] sm:$0xff] }
 0x1e7   : > { %3952 = vmatprep.mubr.msk.f32.mxu1 %vm1346_vm2, %v5100_v34  ;;  %v4110_v34 = vld [vmem:[%s4219_s16 + $0x40] sm:$0xff] }
 0x1e8   : > { %4000 = vmatmul.mubr.msk.f32.gmra.mxu0 %vm312_vm1, %v4109_v53 }
 0x1e9   : > { %4002 = vmatprep.mubr.msk.f32.mxu0 %vm312_vm1, %v4110_v34 }
 0x1ea   : > { %3953 = vmatmul.mubr.msk.f32.gmra.mxu1 %vm1346_vm2, %v5110_v54  ;;  %v4111_v54 = vld [vmem:[%s4219_s16 + $0x48] sm:$0xff] }
 0x1eb   : > { %3955 = vmatprep.mubr.msk.f32.mxu1 %vm1346_vm2, %v5120_v56  ;;  %v4112_v56 = vld [vmem:[%s4219_s16 + $0x50] sm:$0xff] }
 0x1ec   : > { %4003 = vmatmul.mubr.msk.f32.gmra.mxu0 %vm312_vm1, %v4111_v54 }
 0x1ed   : > { %4005 = vmatprep.mubr.msk.f32.mxu0 %vm312_vm1, %v4112_v56 }
 0x1ee   : > { %3956 = vmatmul.mubr.msk.f32.gmra.mxu1 %vm1346_vm2, %v5130_v1  ;;  %v4113_v1 = vld [vmem:[%s4219_s16 + $0x58] sm:$0xff] }
 0x1ef   : > { %3958 = vmatprep.mubr.msk.f32.mxu1 %vm1346_vm2, %v5140_v47  ;;  %v4114_v47 = vld [vmem:[%s4219_s16 + $0x60] sm:$0xff] }
 0x1f0   : > { %4006 = vmatmul.mubr.msk.f32.gmra.mxu0 %vm312_vm1, %v4113_v1 }
 0x1f1   : > { %4008 = vmatprep.mubr.msk.f32.mxu0 %vm312_vm1, %v4114_v47 }
 0x1f2   : > { %3959 = vmatmul.mubr.msk.f32.gmra.mxu1 %vm1346_vm2, %v5150_v0  ;;  %v4115_v0 = vld [vmem:[%s4219_s16 + $0x68] sm:$0xff] }
 0x1f3   : > { %3961 = vmatprep.mubr.msk.f32.mxu1 %vm1346_vm2, %v5160_v35  ;;  %v4116_v35 = vld [vmem:[%s4219_s16 + $0x70] sm:$0xff] }
 0x1f4   : > { %4009 = vmatmul.mubr.msk.f32.gmra.mxu0 %vm312_vm1, %v4115_v0 }
 0x1f5   : > { %4011 = vmatprep.mubr.msk.f32.mxu0 %vm312_vm1, %v4116_v35 }
 0x1f6   : > { %3962 = vmatmul.mubr.msk.f32.gmra.mxu1 %vm1346_vm2, %v5170_v15  ;;  %v4117_v15 = vld [vmem:[%s4219_s16 + $0x78] sm:$0xff] }
 0x1f7   : > { %3964 = vmatprep.mubr.msk.f32.mxu1 %vm1346_vm2, %v5180_v37  ;;  %v4118_v37 = vld [vmem:[%s4219_s16 + $0x80] sm:$0xff] }
 0x1f8   : > { %4012 = vmatmul.mubr.msk.f32.gmra.mxu0 %vm312_vm1, %v4117_v15 }
 0x1f9   : > { %4014 = vmatprep.mubr.msk.f32.mxu0 %vm312_vm1, %v4118_v37 }
 0x1fa   : > { %3965 = vmatmul.mubr.msk.f32.gmra.mxu1 %vm1346_vm2, %v5190_v31  ;;  %v4119_v31 = vld [vmem:[%s4219_s16 + $0x88] sm:$0xff] }
 0x1fb   : > { %3967 = vmatprep.mubr.msk.f32.mxu1 %vm1346_vm2, %v5200_v20  ;;  %v4120_v20 = vld [vmem:[%s4219_s16 + $0x90] sm:$0xff] }
 0x1fc   : > { %4015 = vmatmul.mubr.msk.f32.gmra.mxu0 %vm312_vm1, %v4119_v31 }
 0x1fd   : > { %4017 = vmatprep.mubr.msk.f32.mxu0 %vm312_vm1, %v4120_v20 }
 0x1fe   : > { %3968 = vmatmul.mubr.msk.f32.gmra.mxu1 %vm1346_vm2, %v5210_v48  ;;  %v4122_v48 = vld [vmem:[%s4219_s16 + $0xa0] sm:$0xff] }
 0x1ff   : > { %3970 = vmatprep.mubr.msk.f32.mxu1 %vm1346_vm2, %v5220_v28  ;;  %v4126_v28 = vld [vmem:[%s4219_s16 + $0xc0] sm:$0xff] }
 0x200   : > { %4018 = vmatmul.mubr.msk.f32.gmra.mxu0 %vm312_vm1, %v4121_v39 }
 0x201   : > { %4020 = vmatprep.mubr.msk.f32.mxu0 %vm312_vm1, %v4122_v48 }
 0x202   : > { %3971 = vmatmul.mubr.msk.f32.gmra.mxu1 %vm1346_vm2, %v5227_v11  ;;  %v4128_v11 = vld [vmem:[%s4219_s16 + $0xd0] sm:$0xff] }
 0x203   : > { %3973 = vmatprep.mubr.msk.f32.mxu1 %vm1346_vm2, %v5236_v18 }
 0x204   : > { %4021 = vmatmul.mubr.msk.f32.gmra.mxu0 %vm312_vm1, %v4123_v27 }
 0x205   : > { %4023 = vmatprep.mubr.msk.f32.mxu0 %vm312_vm1, %v4124_v24 }
 0x206   : > { %3974 = vmatmul.mubr.msk.f32.gmra.mxu1 %vm1346_vm2, %v5249_v5 }
 0x207   : > { %3976 = vmatprep.mubr.msk.f32.mxu1 %vm1346_vm2, %v5262_v49 }
 0x208   : > { %4024 = vmatmul.mubr.msk.f32.gmra.mxu0 %vm312_vm1, %v4125_v36 }
 0x209   : > { %4026 = vmatprep.mubr.msk.f32.mxu0 %vm312_vm1, %v4126_v28 }
 0x20a   : > { %3977 = vmatmul.mubr.msk.f32.gmra.mxu1 %vm1346_vm2, %v5277_v26 }
 0x20b   : > { %3979 = vmatprep.mubr.msk.f32.mxu1 %vm1346_vm2, %v5284_v23 }
 0x20c   : > { %4027 = vmatmul.mubr.msk.f32.gmra.mxu0 %vm312_vm1, %v4127_v16 }
 0x20d   : > { %4029 = vmatprep.mubr.msk.f32.mxu0 %vm312_vm1, %v4128_v11 }
 0x20e   : > { %3980 = vmatmul.mubr.msk.f32.gmra.mxu1 %vm1346_vm2, %v5291_v13 }
 0x20f   : > { %3982 = vmatprep.mubr.msk.f32.mxu1 %vm1346_vm2, %v5297_v59 }
 0x210   : > { %4030 = vmatmul.mubr.msk.f32.gmra.mxu0 %vm312_vm1, %v4129_v4 }
 0x211   : > { %4032 = vmatprep.mubr.msk.f32.mxu0 %vm312_vm1, %v4130_v62 }
 0x212   : > { %3983 = vmatmul.mubr.msk.f32.gmra.mxu1 %vm1346_vm2, %v5303_v40 }
 0x213   : > { %3985 = vmatprep.mubr.msk.f32.mxu1 %vm1346_vm2, %v2299_v32 }
 0x214   : > { %4033 = vmatmul.mubr.msk.f32.gmra.mxu0 %vm312_vm1, %v4131_v63 }
 0x215   : > { %4035 = vmatprep.mubr.msk.f32.mxu0 %vm312_vm1, %v4132_v19 }
 0x216   : > { %3986 = vmatmul.mubr.msk.f32.gmra.mxu1 %vm1346_vm2, %v2300_v8 }
 0x218   : > { %4036 = vmatmul.mubr.msk.f32.gmra.mxu0 %vm312_vm1, %v4133_v9 }
 0x21d   : > { %v3838_v18 = vpop.f32.mrf.mxu1  ;;  %v3893_v21 = vpop.f32.mrf.mxu0 }
 0x21e   : > { %v2116_v35 = vadd.f32 %v3890_v43, %v3838_v18 }
 0x21f   : > { %v1876_v51 = vpop.f32.mrf.mxu1  ;;  %v2120_v13 = vpop.f32.mrf.mxu0 }
 0x220   : > { %v2111_v31 = vadd.f32 %v2110_v7, %v1876_v51 }
 0x225   : > { %v3841_v44 = vpop.f32.mrf.mxu1  ;;  %v3896_v30 = vpop.f32.mrf.mxu0 }
 0x226   : > { %v2126_v27 = vadd.f32 %v3893_v21, %v3841_v44 }
 0x227   : > { %v1886_v50 = vpop.f32.mrf.mxu1  ;;  %v2130_v3 = vpop.f32.mrf.mxu0 }
 0x228   : > { %v2121_v36 = vadd.f32 %v2120_v13, %v1886_v50 }
 0x22d   : > { %v3844_v2 = vpop.f32.mrf.mxu1  ;;  %v3899_v12 = vpop.f32.mrf.mxu0 }
 0x22e   : > { %v2136_v63 = vadd.f32 %v3896_v30, %v3844_v2 }
 0x22f   : > { %v1896_v14 = vpop.f32.mrf.mxu1  ;;  %v2140_v61 = vpop.f32.mrf.mxu0 }
 0x230   : > { %v2131_v9 = vadd.f32 %v2130_v3, %v1896_v14 }
 0x235   : > { %v5441_v38 = vpop.f32.mrf.mxu1  ;;  %v3902_v33 = vpop.f32.mrf.mxu0 }
 0x236   : > { %v2146_v50 = vadd.f32 %v3899_v12, %v5441_v38 }
 0x237   : > { %v5443_v29 = vpop.f32.mrf.mxu1  ;;  %v2150_v34 = vpop.f32.mrf.mxu0 }
 0x238   : > { %v2141_v2 = vadd.f32 %v2140_v61, %v5443_v29 }
 0x23d   : > { %v5445_v5 = vpop.f32.mrf.mxu1  ;;  %v3905_v56 = vpop.f32.mrf.mxu0 }
 0x23f   : > { %v5447_v52 = vpop.f32.mrf.mxu1  ;;  %v2160_v47 = vpop.f32.mrf.mxu0 }
 0x240   : > { %v2151_v38 = vadd.f32 %v2150_v34, %v5447_v52 }
 0x245   : > { %v5449_v46 = vpop.f32.mrf.mxu1  ;;  %v3908_v15 = vpop.f32.mrf.mxu0 }
 0x247   : > { %v5451_v25 = vpop.f32.mrf.mxu1  ;;  %v2170_v24 = vpop.f32.mrf.mxu0 }
 0x24d   : > { %v5453_v10 = vpop.f32.mrf.mxu1  ;;  %v3911_v8 = vpop.f32.mrf.mxu0 }
 0x24f   : > { %v5455_v55 = vpop.f32.mrf.mxu1  ;;  %v2180_v51 = vpop.f32.mrf.mxu0 }
 0x255   : > { %v5457_v41 = vpop.f32.mrf.mxu1  ;;  %v3914_v13 = vpop.f32.mrf.mxu0 }
 0x257   : > { %v5459_v49 = vpop.f32.mrf.mxu1 }
 0x25d   : > { %v5461_v45 = vpop.f32.mrf.mxu1 }
 0x25f   : > { %v5463_v6 = vpop.f32.mrf.mxu1 }
 0x265   : > { %v5465_v22 = vpop.f32.mrf.mxu1 }
 0x267   : > { %v5467_v57 = vpop.f32.mrf.mxu1 }
 0x26d   : > { %v5469_v26 = vpop.f32.mrf.mxu1 }
 0x26f   : > { %v5471_v23 = vpop.f32.mrf.mxu1 }
 0x275   : > { %v5473_v59 = vpop.f32.mrf.mxu1 }
 0x277   : > { %v5475_v40 = vpop.f32.mrf.mxu1 }
 0x281   : > { %v5477_v42 = vpop.f32.mrf.mxu1 }
 0x283   : > { %v5479_v58 = vpop.f32.mrf.mxu1 }
 0x28d   : > { %v5481_v17 = vpop.f32.mrf.mxu1 }
 0x28f   : > { %v5483_v60 = vpop.f32.mrf.mxu1 }
 0x291   : > { %v5485_v53 = vpop.f32.mrf.mxu1 }
 0x293   : > { %v5487_v54 = vpop.f32.mrf.mxu1 }
 0x296   : > { %v5489_v1 = vpop.f32.mrf.mxu1 }
 0x298   : > { %v5491_v0 = vpop.f32.mrf.mxu1 }
 0x29a   : > { %v3942_v37 = vpop.f32.mrf.mxu1 }
 0x29b   : > { %v2629_v20 = vadd.f32 %v3942_v37, %v2116_v35 }
 0x29c   : > { %v2469_v39 = vpop.f32.mrf.mxu1 }
 0x29d   : > { %v2628_v48 = vadd.f32 %v2469_v39, %v2111_v31  ;;  %v2661_v16 = vmax.f32 %v2629_v20, 0.0  ;;  %v2156_v20 = vadd.f32 %v3902_v33, %v5445_v5  ;;  %v2190_v39 = vpop.f32.mrf.mxu0  ;;  %v2161_v5 = vadd.f32 %v2160_v47, %v5451_v25 }
 0x29e   : > { %v3945_v32 = vpop.f32.mrf.mxu1 }
 0x29f   : > { %v2660_v28 = vmax.f32 %v2628_v48, 0.0  ;;  %v2631_v11 = vadd.f32 %v3945_v32, %v2126_v27  ;;  %v3917_v27 = vpop.f32.mrf.mxu0 }
 0x2a0   : > { %v2479_v4 = vpop.f32.mrf.mxu1 }
 0x2a1   : > { %v2630_v62 = vadd.f32 %v2479_v4, %v2121_v36  ;;  %4040 = vmatprep.mubr.msk.f32.mxu1 %vm312_vm1, %v2660_v28  ;;  %v2663_v43 = vmax.f32 %v2631_v11, 0.0  ;;  %v2166_v28 = vadd.f32 %v3905_v56, %v5449_v46  ;;  %v2200_v11 = vpop.f32.mrf.mxu0  ;;  %v2171_v46 = vadd.f32 %v2170_v24, %v5455_v55 }
 0x2a2   : > { %v3948_v19 = vpop.f32.mrf.mxu1  ;;  %4041 = vmatmul.mubr.msk.f32.vlgmr.msra.gmra.mxu1 %vm312_vm1, %v2661_v16 }
 0x2a3   : > { %v2662_v18 = vmax.f32 %v2630_v62, 0.0  ;;  %v2633_v44 = vadd.f32 %v3948_v19, %v2136_v63  ;;  %v2176_v63 = vadd.f32 %v3908_v15, %v5453_v10  ;;  %v3920_v19 = vpop.f32.mrf.mxu0  ;;  %v2181_v10 = vadd.f32 %v2180_v51, %v5459_v49 }
 0x2a4   : > { %v2489_v7 = vpop.f32.mrf.mxu1 }
 0x2a5   : > { %v2632_v21 = vadd.f32 %v2489_v7, %v2131_v9  ;;  %4043 = vmatprep.mubr.msk.f32.mxu1 %vm312_vm1, %v2662_v18  ;;  %v2665_v37 = vmax.f32 %v2633_v44, 0.0  ;;  %v2186_v44 = vadd.f32 %v3911_v8, %v5457_v41  ;;  %v2210_v7 = vpop.f32.mrf.mxu0  ;;  %v2191_v41 = vadd.f32 %v2190_v39, %v5463_v6 }
 0x2a6   : > { %v3951_v35 = vpop.f32.mrf.mxu1  ;;  %4044 = vmatmul.mubr.msk.f32.gmra.mxu1 %vm312_vm1, %v2663_v43 }
 0x2a7   : > { %v2664_v30 = vmax.f32 %v2632_v21, 0.0  ;;  %v2635_v31 = vadd.f32 %v3951_v35, %v2146_v50  ;;  %v3923_v50 = vpop.f32.mrf.mxu0 }
 0x2a8   : > { %v2499_v14 = vpop.f32.mrf.mxu1 }
 0x2a9   : > { %v2634_v3 = vadd.f32 %v2499_v14, %v2141_v2  ;;  %4046 = vmatprep.mubr.msk.f32.mxu1 %vm312_vm1, %v2664_v30  ;;  %v2667_v32 = vmax.f32 %v2635_v31, 0.0  ;;  %v2196_v30 = vadd.f32 %v3914_v13, %v5461_v45  ;;  %v2220_v31 = vpop.f32.mrf.mxu0  ;;  %v2201_v45 = vadd.f32 %v2200_v11, %v5467_v57 }
 0x2aa   : > { %v3954_v48 = vpop.f32.mrf.mxu1  ;;  %4047 = vmatmul.mubr.msk.f32.gmra.mxu1 %vm312_vm1, %v2665_v37  ;;  %v2226_v11 = vadd.f32 %v3923_v50, %v5473_v59 }
 0x2ab   : > { %v2666_v12 = vmax.f32 %v2634_v3, 0.0  ;;  %v2637_v36 = vadd.f32 %v3954_v48, %v2156_v20  ;;  %v2206_v20 = vadd.f32 %v3917_v27, %v5465_v22  ;;  %v3926_v48 = vpop.f32.mrf.mxu0  ;;  %v2211_v22 = vadd.f32 %v2210_v7, %v5471_v23 }
 0x2ac   : > { %v2509_v29 = vpop.f32.mrf.mxu1 }
 0x2ad   : > { %v2636_v61 = vadd.f32 %v2509_v29, %v2151_v38  ;;  %4049 = vmatprep.mubr.msk.f32.mxu1 %vm312_vm1, %v2666_v12  ;;  %v2669_v4 = vmax.f32 %v2637_v36, 0.0  ;;  %v2216_v36 = vadd.f32 %v3920_v19, %v5469_v26  ;;  %v2230_v29 = vpop.f32.mrf.mxu0  ;;  %v2221_v26 = vadd.f32 %v2220_v31, %v5475_v40 }
 0x2ae   : > { %v3957_v16 = vpop.f32.mrf.mxu1  ;;  %4050 = vmatmul.mubr.msk.f32.gmra.mxu1 %vm312_vm1, %v2667_v32  ;;  %v2231_v59 = vadd.f32 %v2230_v29, %v5479_v58 }
 0x2af   : > { %v2668_v33 = vmax.f32 %v2636_v61, 0.0  ;;  %v2639_v62 = vadd.f32 %v3957_v16, %v2166_v28  ;;  %v3929_v28 = vpop.f32.mrf.mxu0 }
 0x2b0   : > { %v2519_v52 = vpop.f32.mrf.mxu1 }
 0x2b1   : > { %v2638_v34 = vadd.f32 %v2519_v52, %v2161_v5  ;;  %4052 = vmatprep.mubr.msk.f32.mxu1 %vm312_vm1, %v2668_v33  ;;  %v2671_v18 = vmax.f32 %v2639_v62, 0.0  ;;  %v2240_v52 = vpop.f32.mrf.mxu0 }
 0x2b2   : > { %v3960_v9 = vpop.f32.mrf.mxu1  ;;  %4053 = vmatmul.mubr.msk.f32.gmra.mxu1 %vm312_vm1, %v2669_v4 }
 0x2b3   : > { %v2670_v56 = vmax.f32 %v2638_v34, 0.0  ;;  %v2641_v43 = vadd.f32 %v3960_v9, %v2176_v63  ;;  %v2236_v9 = vadd.f32 %v3926_v48, %v5477_v42  ;;  %v2241_v42 = vadd.f32 %v2240_v52, %v5483_v60 }
 0x2b4   : > { %v2529_v25 = vpop.f32.mrf.mxu1 }
 0x2b5   : > { %v2640_v47 = vadd.f32 %v2529_v25, %v2171_v46  ;;  %4055 = vmatprep.mubr.msk.f32.mxu1 %vm312_vm1, %v2670_v56  ;;  %v2673_v35 = vmax.f32 %v2641_v43, 0.0  ;;  %v3932_v46 = vpop.f32.mrf.mxu0 }
 0x2b6   : > { %v3963_v21 = vpop.f32.mrf.mxu1  ;;  %4056 = vmatmul.mubr.msk.f32.gmra.mxu1 %vm312_vm1, %v2671_v18 }
 0x2b7   : > { %v2672_v15 = vmax.f32 %v2640_v47, 0.0  ;;  %v2643_v2 = vadd.f32 %v3963_v21, %v2186_v44  ;;  %v2246_v44 = vadd.f32 %v3929_v28, %v5481_v17  ;;  %v2250_v7 = vpop.f32.mrf.mxu0 }
 0x2b8   : > { %v2539_v55 = vpop.f32.mrf.mxu1  ;;  %v2251_v17 = vadd.f32 %v2250_v7, %v5487_v54 }
 0x2b9   : > { %v2642_v24 = vadd.f32 %v2539_v55, %v2181_v10  ;;  %4058 = vmatprep.mubr.msk.f32.mxu1 %vm312_vm1, %v2672_v15  ;;  %v2675_v14 = vmax.f32 %v2643_v2, 0.0  ;;  %v2256_v2 = vadd.f32 %v3932_v46, %v5485_v53  ;;  %v3935_v55 = vpop.f32.mrf.mxu0 }
 0x2ba   : > { %v3966_v37 = vpop.f32.mrf.mxu1  ;;  %4059 = vmatmul.mubr.msk.f32.gmra.mxu1 %vm312_vm1, %v2673_v35 }
 0x2bb   : > { %v2674_v8 = vmax.f32 %v2642_v24, 0.0  ;;  %v2645_v3 = vadd.f32 %v3966_v37, %v2196_v30  ;;  %v2260_v31 = vpop.f32.mrf.mxu0 }
 0x2bc   : > { %v2549_v49 = vpop.f32.mrf.mxu1  ;;  %v2261_v53 = vadd.f32 %v2260_v31, %v5491_v0 }
 0x2bd   : > { %v2644_v51 = vadd.f32 %v2549_v49, %v2191_v41  ;;  %4061 = vmatprep.mubr.msk.f32.mxu1 %vm312_vm1, %v2674_v8  ;;  %v2677_v12 = vmax.f32 %v2645_v3, 0.0 }
 0x2be   : > { %v3969_v38 = vpop.f32.mrf.mxu1  ;;  %4062 = vmatmul.mubr.msk.f32.gmra.mxu1 %vm312_vm1, %v2675_v14  ;;  %v2266_v14 = vadd.f32 %v3935_v55, %v5489_v1  ;;  %v3992_v1 = vpop.f32.mrf.mxu0 }
 0x2bf   : > { %v2676_v13 = vmax.f32 %v2644_v51, 0.0  ;;  %v2647_v32 = vadd.f32 %v3969_v38, %v2206_v20 }
 0x2c0   : > { %v2559_v6 = vpop.f32.mrf.mxu1 }
 0x2c1   : > { %v2646_v39 = vadd.f32 %v2559_v6, %v2201_v45  ;;  %4064 = vmatprep.mubr.msk.f32.mxu1 %vm312_vm1, %v2676_v13  ;;  %v2679_v16 = vmax.f32 %v2647_v32, 0.0  ;;  %v2763_v13 = vpop.f32.mrf.mxu0 }
 0x2c2   : > { %v3972_v61 = vpop.f32.mrf.mxu1  ;;  %4065 = vmatmul.mubr.msk.f32.gmra.mxu1 %vm312_vm1, %v2677_v12 }
 0x2c3   : > { %v2678_v27 = vmax.f32 %v2646_v39, 0.0  ;;  %v2649_v5 = vadd.f32 %v3972_v61, %v2216_v36  ;;  %v3995_v12 = vpop.f32.mrf.mxu0 }
 0x2c4   : > { %v2569_v57 = vpop.f32.mrf.mxu1 }
 0x2c5   : > { %v2648_v33 = vadd.f32 %v2569_v57, %v2211_v22  ;;  %4067 = vmatprep.mubr.msk.f32.mxu1 %vm312_vm1, %v2678_v27  ;;  %v2681_v34 = vmax.f32 %v2649_v5, 0.0  ;;  %v2773_v0 = vpop.f32.mrf.mxu0 }
 0x2c6   : > { %v3975_v4 = vpop.f32.mrf.mxu1  ;;  %4068 = vmatmul.mubr.msk.f32.gmra.mxu1 %vm312_vm1, %v2679_v16 }
 0x2c7   : > { %v2680_v62 = vmax.f32 %v2648_v33, 0.0  ;;  %v2651_v63 = vadd.f32 %v3975_v4, %v2226_v11  ;;  %v3998_v32 = vpop.f32.mrf.mxu0 }
 0x2c8   : > { %v2579_v23 = vpop.f32.mrf.mxu1 }
 0x2c9   : > { %v2650_v19 = vadd.f32 %v2579_v23, %v2221_v26  ;;  %4070 = vmatprep.mubr.msk.f32.mxu1 %vm312_vm1, %v2680_v62  ;;  %v2683_v43 = vmax.f32 %v2651_v63, 0.0  ;;  %v2783_v6 = vpop.f32.mrf.mxu0 }
 0x2ca   : > { %v3978_v56 = vpop.f32.mrf.mxu1  ;;  %4071 = vmatmul.mubr.msk.f32.gmra.mxu1 %vm312_vm1, %v2681_v34 }
 0x2cb   : > { %v2682_v18 = vmax.f32 %v2650_v19, 0.0  ;;  %v2653_v25 = vadd.f32 %v3978_v56, %v2236_v9  ;;  %v4001_v39 = vpop.f32.mrf.mxu0 }
 0x2cc   : > { %v2589_v40 = vpop.f32.mrf.mxu1 }
 0x2cd   : > { %v2652_v47 = vadd.f32 %v2589_v40, %v2231_v59  ;;  %4073 = vmatprep.mubr.msk.f32.mxu1 %vm312_vm1, %v2682_v18  ;;  %v2685_v15 = vmax.f32 %v2653_v25, 0.0  ;;  %v2793_v36 = vpop.f32.mrf.mxu0 }
 0x2ce   : > { %v3981_v21 = vpop.f32.mrf.mxu1  ;;  %4074 = vmatmul.mubr.msk.f32.gmra.mxu1 %vm312_vm1, %v2683_v43 }
 0x2cf   : > { %v2684_v10 = vmax.f32 %v2652_v47, 0.0  ;;  %v2655_v50 = vadd.f32 %v3981_v21, %v2246_v44  ;;  %v4004_v29 = vpop.f32.mrf.mxu0 }
 0x2d0   : > { %v2599_v35 = vpop.f32.mrf.mxu1 }
 0x2d1   : > { %v2654_v58 = vadd.f32 %v2599_v35, %v2241_v42  ;;  %4076 = vmatprep.mubr.msk.f32.mxu1 %vm312_vm1, %v2684_v10  ;;  %v2687_v37 = vmax.f32 %v2655_v50, 0.0  ;;  %v2803_v61 = vpop.f32.mrf.mxu0 }
 0x2d2   : > { %v3984_v24 = vpop.f32.mrf.mxu1  ;;  %4077 = vmatmul.mubr.msk.f32.gmra.mxu1 %vm312_vm1, %v2685_v15 }
 0x2d3   : > { %v2686_v30 = vmax.f32 %v2654_v58, 0.0  ;;  %v2657_v41 = vadd.f32 %v3984_v24, %v2256_v2  ;;  %v4007_v22 = vpop.f32.mrf.mxu0 }
 0x2d4   : > { %v2609_v8 = vpop.f32.mrf.mxu1 }
 0x2d5   : > { %v2656_v60 = vadd.f32 %v2609_v8, %v2251_v17  ;;  %4079 = vmatprep.mubr.msk.f32.mxu1 %vm312_vm1, %v2686_v30  ;;  %v2689_v51 = vmax.f32 %v2657_v41, 0.0  ;;  %v2813_v27 = vpop.f32.mrf.mxu0 }
 0x2d6   : > { %v3987_v3 = vpop.f32.mrf.mxu1  ;;  %4080 = vmatmul.mubr.msk.f32.gmra.mxu1 %vm312_vm1, %v2687_v37 }
 0x2d7   : > { %v2688_v49 = vmax.f32 %v2656_v60, 0.0  ;;  %v2659_v20 = vadd.f32 %v3987_v3, %v2266_v14  ;;  %v4010_v28 = vpop.f32.mrf.mxu0 }
 0x2d8   : > { %v2619_v48 = vpop.f32.mrf.mxu1 }
 0x2d9   : > { %v2658_v54 = vadd.f32 %v2619_v48, %v2261_v53  ;;  %4082 = vmatprep.mubr.msk.f32.mxu1 %vm312_vm1, %v2688_v49  ;;  %v2691_v45 = vmax.f32 %v2659_v20, 0.0  ;;  %v5551_v16 = vpop.f32.mrf.mxu0 }
 0x2da   : > { %4083 = vmatmul.mubr.msk.f32.gmra.mxu1 %vm312_vm1, %v2689_v51 }
 0x2db   : > { %v2690_v38 = vmax.f32 %v2658_v54, 0.0  ;;  %v5553_v5 = vpop.f32.mrf.mxu0 }
 0x2dd   : > { %4085 = vmatprep.mubr.msk.f32.mxu1 %vm312_vm1, %v2690_v38  ;;  %v5555_v57 = vpop.f32.mrf.mxu0 }
 0x2de   : > { %4086 = vmatmul.mubr.msk.f32.gmra.mxu1 %vm312_vm1, %v2691_v45 }
 0x2df   : > { %v5564_v26 = vpop.f32.mrf.mxu0 }
 0x2e1   : > { %v5568_v9 = vpop.f32.mrf.mxu0 }
 0x2e3   : > { %v4019_v40 = vpop.f32.mrf.mxu0 }
 0x2e5   : > { %v2853_v15 = vpop.f32.mrf.mxu0 }
 0x2e7   : > { %v4022_v17 = vpop.f32.mrf.mxu0 }
 0x2e9   : > { %v2863_v14 = vpop.f32.mrf.mxu0 }
 0x2eb   : > { %v4025_v54 = vpop.f32.mrf.mxu0 }
 0x362   : > { %v4042_v33 = vpop.f32.mrf.mxu1 }
 0x363   : > { %v3093_v11 = vadd.f32 %v4042_v33, %v3992_v1 }
 0x364   : > { %v3087_v4 = vpop.f32.mrf.mxu1 }
 0x365   : > { %v3247_v62 = vmax.f32 %v3093_v11, 0.0  ;;  %v3088_v52 = vadd.f32 %v3087_v4, %v2763_v13 }
 0x366   : > { %v4045_v34 = vpop.f32.mrf.mxu1 }
 0x367   : > { %3280 = vst.msk [vmem:[%s5562_s23 + $0x8] sm:$0xff] %vm3278_vm6, %v3247_v62  ;;  %v3246_v63 = vmax.f32 %v3088_v52, 0.0  ;;  %v3103_v23 = vadd.f32 %v4045_v34, %v3995_v12 }
 0x368   : > { %v3097_v19 = vpop.f32.mrf.mxu1 }
 0x369   : > { %3279 = vst.msk [vmem:[%s5562_s23] sm:$0xff] %vm3278_vm6, %v3246_v63  ;;  %v3249_v46 = vmax.f32 %v3103_v23, 0.0  ;;  %v3098_v56 = vadd.f32 %v3097_v19, %v2773_v0 }
 0x36a   : > { %v4048_v59 = vpop.f32.mrf.mxu1 }
 0x36b   : > { %3282 = vst.msk [vmem:[%s5562_s23 + $0x18] sm:$0xff] %vm3278_vm6, %v3249_v46  ;;  %v3248_v18 = vmax.f32 %v3098_v56, 0.0  ;;  %v3113_v43 = vadd.f32 %v4048_v59, %v3998_v32  ;;  %v2873_v32 = vpop.f32.mrf.mxu0 }
 0x36c   : > { %v3107_v25 = vpop.f32.mrf.mxu1 }
 0x36d   : > { %3281 = vst.msk [vmem:[%s5562_s23 + $0x10] sm:$0xff] %vm3278_vm6, %v3248_v18  ;;  %v3251_v47 = vmax.f32 %v3113_v43, 0.0  ;;  %v3108_v44 = vadd.f32 %v3107_v25, %v2783_v6 }
 0x36e   : > { %v4051_v7 = vpop.f32.mrf.mxu1 }
 0x36f   : > { %3284 = vst.msk [vmem:[%s5562_s23 + $0x28] sm:$0xff] %vm3278_vm6, %v3251_v47  ;;  %v3250_v21 = vmax.f32 %v3108_v44, 0.0  ;;  %v3123_v42 = vadd.f32 %v4051_v7, %v4001_v39 }
 0x370   : > { %v3117_v10 = vpop.f32.mrf.mxu1 }
 0x371   : > { %3283 = vst.msk [vmem:[%s5562_s23 + $0x20] sm:$0xff] %vm3278_vm6, %v3250_v21  ;;  %v3253_v50 = vmax.f32 %v3123_v42, 0.0  ;;  %v3118_v35 = vadd.f32 %v3117_v10, %v2793_v36 }
 0x372   : > { %v4054_v58 = vpop.f32.mrf.mxu1 }
 0x373   : > { %3286 = vst.msk [vmem:[%s5562_s23 + $0x38] sm:$0xff] %vm3278_vm6, %v3253_v50  ;;  %v3252_v2 = vmax.f32 %v3118_v35, 0.0  ;;  %v3133_v55 = vadd.f32 %v4054_v58, %v4004_v29 }
 0x374   : > { %v3127_v24 = vpop.f32.mrf.mxu1 }
 0x375   : > { %3285 = vst.msk [vmem:[%s5562_s23 + $0x30] sm:$0xff] %vm3278_vm6, %v3252_v2  ;;  %v3255_v30 = vmax.f32 %v3133_v55, 0.0  ;;  %v3128_v37 = vadd.f32 %v3127_v24, %v2803_v61 }
 0x376   : > { %v4057_v41 = vpop.f32.mrf.mxu1 }
 0x377   : > { %3288 = vst.msk [vmem:[%s5562_s23 + $0x48] sm:$0xff] %vm3278_vm6, %v3255_v30  ;;  %v3254_v8 = vmax.f32 %v3128_v37, 0.0  ;;  %v3143_v60 = vadd.f32 %v4057_v41, %v4007_v22 }
 0x378   : > { %v3137_v31 = vpop.f32.mrf.mxu1 }
 0x379   : > { %3287 = vst.msk [vmem:[%s5562_s23 + $0x40] sm:$0xff] %vm3278_vm6, %v3254_v8  ;;  %v3257_v3 = vmax.f32 %v3143_v60, 0.0  ;;  %v3138_v53 = vadd.f32 %v3137_v31, %v2813_v27  ;;  %v4028_v27 = vpop.f32.mrf.mxu0 }
 0x37a   : > { %v4060_v49 = vpop.f32.mrf.mxu1 }
 0x37b   : > { %3290 = vst.msk [vmem:[%s5562_s23 + $0x58] sm:$0xff] %vm3278_vm6, %v3257_v3  ;;  %v3256_v51 = vmax.f32 %v3138_v53, 0.0  ;;  %v3153_v20 = vadd.f32 %v4060_v49, %v4010_v28  ;;  %v2883_v4 = vpop.f32.mrf.mxu0 }
 0x37c   : > { %v3147_v48 = vpop.f32.mrf.mxu1 }
 0x37d   : > { %3289 = vst.msk [vmem:[%s5562_s23 + $0x50] sm:$0xff] %vm3278_vm6, %v3256_v51  ;;  %v3259_v38 = vmax.f32 %v3153_v20, 0.0  ;;  %v3148_v45 = vadd.f32 %v3147_v48, %v5551_v16  ;;  %v4031_v19 = vpop.f32.mrf.mxu0 }
 0x37e   : > { %v4063_v1 = vpop.f32.mrf.mxu1 }
 0x37f   : > { %3292 = vst.msk [vmem:[%s5562_s23 + $0x68] sm:$0xff] %vm3278_vm6, %v3259_v38  ;;  %v3258_v13 = vmax.f32 %v3148_v45, 0.0  ;;  %v3163_v12 = vadd.f32 %v4063_v1, %v5553_v5  ;;  %v2893_v25 = vpop.f32.mrf.mxu0 }
 0x380   : > { %v3157_v0 = vpop.f32.mrf.mxu1 }
 0x381   : > { %3291 = vst.msk [vmem:[%s5562_s23 + $0x60] sm:$0xff] %vm3278_vm6, %v3258_v13  ;;  %v3261_v6 = vmax.f32 %v3163_v12, 0.0  ;;  %v3158_v39 = vadd.f32 %v3157_v0, %v5555_v57  ;;  %v4034_v10 = vpop.f32.mrf.mxu0 }
 0x382   : > { %v4066_v36 = vpop.f32.mrf.mxu1 }
 0x383   : > { %3294 = vst.msk [vmem:[%s5562_s23 + $0x78] sm:$0xff] %vm3278_vm6, %v3261_v6  ;;  %v3260_v29 = vmax.f32 %v3158_v39, 0.0  ;;  %v3173_v61 = vadd.f32 %v4066_v36, %v5564_v26  ;;  %v2903_v24 = vpop.f32.mrf.mxu0 }
 0x384   : > { %v3167_v22 = vpop.f32.mrf.mxu1 }
 0x385   : > { %3293 = vst.msk [vmem:[%s5562_s23 + $0x70] sm:$0xff] %vm3278_vm6, %v3260_v29  ;;  %v3263_v28 = vmax.f32 %v3173_v61, 0.0  ;;  %v3168_v16 = vadd.f32 %v3167_v22, %v5568_v9  ;;  %v4037_v60 = vpop.f32.mrf.mxu0 }
 0x386   : > { %v4069_v5 = vpop.f32.mrf.mxu1 }
 0x387   : > { %3296 = vst.msk [vmem:[%s5562_s23 + $0x88] sm:$0xff] %vm3278_vm6, %v3263_v28  ;;  %v3262_v57 = vmax.f32 %v3168_v16, 0.0  ;;  %v3183_v33 = vadd.f32 %v4069_v5, %v4019_v40  ;;  %v2913_v20 = vpop.f32.mrf.mxu0 }
 0x388   : > { %v3177_v11 = vpop.f32.mrf.mxu1 }
 0x389   : > { %3295 = vst.msk [vmem:[%s5562_s23 + $0x80] sm:$0xff] %vm3278_vm6, %v3262_v57  ;;  %v3265_v26 = vmax.f32 %v3183_v33, 0.0  ;;  %v3178_v62 = vadd.f32 %v3177_v11, %v2853_v15 }
 0x38a   : > { %v4072_v52 = vpop.f32.mrf.mxu1 }
 0x38b   : > { %3298 = vst.msk [vmem:[%s5562_s23 + $0x98] sm:$0xff] %vm3278_vm6, %v3265_v26  ;;  %v3264_v34 = vmax.f32 %v3178_v62, 0.0  ;;  %v3193_v63 = vadd.f32 %v4072_v52, %v4022_v17 }
 0x38c   : > { %v3187_v23 = vpop.f32.mrf.mxu1 }
 0x38d   : > { %3297 = vst.msk [vmem:[%s5562_s23 + $0x90] sm:$0xff] %vm3278_vm6, %v3264_v34  ;;  %v3267_v9 = vmax.f32 %v3193_v63, 0.0  ;;  %v3188_v46 = vadd.f32 %v3187_v23, %v2863_v14 }
 0x38e   : > { %v4075_v56 = vpop.f32.mrf.mxu1 }
 0x38f   : > { %3300 = vst.msk [vmem:[%s5562_s23 + $0xa8] sm:$0xff] %vm3278_vm6, %v3267_v9  ;;  %v3266_v59 = vmax.f32 %v3188_v46, 0.0  ;;  %v3203_v18 = vadd.f32 %v4075_v56, %v4025_v54 }
 0x390   : > { %v3197_v43 = vpop.f32.mrf.mxu1 }
 0x391   : > { %3299 = vst.msk [vmem:[%s5562_s23 + $0xa0] sm:$0xff] %vm3278_vm6, %v3266_v59  ;;  %v3269_v40 = vmax.f32 %v3203_v18, 0.0  ;;  %v3198_v47 = vadd.f32 %v3197_v43, %v2873_v32 }
 0x392   : > { %v4078_v44 = vpop.f32.mrf.mxu1 }
 0x393   : > { %3302 = vst.msk [vmem:[%s5562_s23 + $0xb8] sm:$0xff] %vm3278_vm6, %v3269_v40  ;;  %v3268_v7 = vmax.f32 %v3198_v47, 0.0  ;;  %v3213_v21 = vadd.f32 %v4078_v44, %v4028_v27 }
 0x394   : > { %v3207_v42 = vpop.f32.mrf.mxu1 }
 0x395   : > { %3301 = vst.msk [vmem:[%s5562_s23 + $0xb0] sm:$0xff] %vm3278_vm6, %v3268_v7  ;;  %v3271_v15 = vmax.f32 %v3213_v21, 0.0  ;;  %v3208_v50 = vadd.f32 %v3207_v42, %v2883_v4 }
 0x396   : > { %v4081_v35 = vpop.f32.mrf.mxu1 }
 0x397   : > { %3304 = vst.msk [vmem:[%s5562_s23 + $0xc8] sm:$0xff] %vm3278_vm6, %v3271_v15  ;;  %v3270_v58 = vmax.f32 %v3208_v50, 0.0  ;;  %v3223_v2 = vadd.f32 %v4081_v35, %v4031_v19 }
 0x398   : > { %v3217_v55 = vpop.f32.mrf.mxu1 }
 0x399   : > { %3303 = vst.msk [vmem:[%s5562_s23 + $0xc0] sm:$0xff] %vm3278_vm6, %v3270_v58  ;;  %v3273_v17 = vmax.f32 %v3223_v2, 0.0  ;;  %v3218_v30 = vadd.f32 %v3217_v55, %v2893_v25 }
 0x39a   : > { %v4084_v37 = vpop.f32.mrf.mxu1 }
 0x39b   : > { %3306 = vst.msk [vmem:[%s5562_s23 + $0xd8] sm:$0xff] %vm3278_vm6, %v3273_v17  ;;  %v3272_v41 = vmax.f32 %v3218_v30, 0.0  ;;  %v3233_v8 = vadd.f32 %v4084_v37, %v4034_v10 }
 0x39c   : > { %v3227_v31 = vpop.f32.mrf.mxu1 }
 0x39d   : > { %3305 = vst.msk [vmem:[%s5562_s23 + $0xd0] sm:$0xff] %vm3278_vm6, %v3272_v41  ;;  %v3275_v14 = vmax.f32 %v3233_v8, 0.0  ;;  %v3228_v3 = vadd.f32 %v3227_v31, %v2903_v24 }
 0x39e   : > { %v4087_v53 = vpop.f32.mrf.mxu1 }
 0x39f   : > { %3308 = vst.msk [vmem:[%s5562_s23 + $0xe8] sm:$0xff] %vm3278_vm6, %v3275_v14  ;;  %v3274_v49 = vmax.f32 %v3228_v3, 0.0  ;;  %v3243_v51 = vadd.f32 %v4087_v53, %v4037_v60 }
 0x3a0   : > { %v3237_v48 = vpop.f32.mrf.mxu1 }
 0x3a1   : > { %3307 = vst.msk [vmem:[%s5562_s23 + $0xe0] sm:$0xff] %vm3278_vm6, %v3274_v49  ;;  %v3277_v54 = vmax.f32 %v3243_v51, 0.0  ;;  %v3238_v38 = vadd.f32 %v3237_v48, %v2913_v20 }
 0x3a3   : > { %3310 = vst.msk [vmem:[%s5562_s23 + $0xf8] sm:$0xff] %vm3278_vm6, %v3277_v54  ;;  %v3276_v45 = vmax.f32 %v3238_v38, 0.0 }
 0x3a5   : > { %3309 = vst.msk [vmem:[%s5562_s23 + $0xf0] sm:$0xff] %vm3278_vm6, %v3276_v45 }
 0x3a6 PF: > { %s17_s24 = sadd.s32 1, %s4140_s24  }
 0x3a7   : > { %p14_p4 = scmp.ge.s32.totalorder %s17_s24, 4  }
 0x3a9   :  { %16 = sbr.rel (!%p14_p4) target bundleno = 1 (0x1), region = 80 }

</bundles_post_ra>
